<compile_context>
chip_gen: v5e
topology: v5e:2x2
jax: 0.10.0
libtpu: 0.0.40
codegen_flags: <defaults>
</compile_context>

<pallas_src>
import math
import jax
import jax.numpy as jnp
from jax import lax
from jax.experimental import pallas as pl
from jax.experimental.pallas import tpu as pltpu


# ----------------------------- helpers ---------------------------------------

def _vmem():
    return pl.BlockSpec(memory_space=pltpu.MemorySpace.VMEM)


def _round_up(x, m):
    return ((x + m - 1) // m) * m


def _pack_rows(mats, cols):
    """Stack matrices along rows into one lane-padded slab.

    Each block is zero-padded to `cols` lanes and to a multiple of 8 rows so
    every in-kernel `w_ref[o:o+rows, :]` view is sublane-aligned.
    Returns (slab, row_offsets).
    """
    blocks, offsets = [], []
    r = 0
    for m in mats:
        rows, c = m.shape
        rpad = _round_up(rows, 8)
        blk = jnp.zeros((rpad, cols), jnp.float32)
        blk = blk.at[:rows, :c].set(m.astype(jnp.float32))
        blocks.append(blk)
        offsets.append(r)
        r += rpad
    return jnp.concatenate(blocks, axis=0), offsets


def _estimate_cost(N, in_dim, H, C, B, n_cls, n_a):
    flops = 0
    layer_dims = [(in_dim, H), (H, H), (H, H), (H, H), (H, H)]
    for fi, fo in layer_dims:
        flops += 2 * N * N * fi            # neighbour aggregation A_norm @ h
        flops += 2 * N * (2 * fi) * fo     # fused self+neighbour linear
    flops += 2 * B * N * H                 # sum-nodes readout
    flops += 2 * N * B * C                 # block-diag mask build
    flops += 2 * C * N * H                 # S^T feat
    flops += 2 * N * N * C + 2 * C * N * C # S^T A S
    flops += 2 * B * C * (n_a * H) + 2 * B * (n_a * H) * H   # pred head (2 dots)
    transcendentals = N * C + 8 * N        # exp + rsqrt / reciprocals
    return int(flops), int(transcendentals)


# ----------------------------- fused Pallas kernel ---------------------------

def make_fused_diffpool_kernel(*, batch_size, nodes_per_graph, assign_num,
                               in_dim, hidden_dim, n_classes, w_offsets,
                               slab_cols):
    B, npg, n_a, H = batch_size, nodes_per_graph, assign_num, hidden_dim
    N = B * npg
    C = B * n_a
    Bp = _round_up(B, 8)          # padded graph-row count (sublane aligned)
    FH = n_a * H                  # flattened pooled-readout width
    o_w1, o_w2, o_w3, o_wf, o_wp, o_pred = w_offsets

    def kernel(h0_ref, adj_ref, w_ref, b_ref, out_ref):
        a = adj_ref[...]                                     # (N, N)

        # Row-normalised adjacency (mean aggregator), computed ONCE and reused
        # by all 5 SAGE layers.  pl.reciprocal(approx=True) uses the EUP slot
        # (~2^-12 rel. error vs exact division — fine for inference).
        deg = jnp.sum(a, axis=-1, keepdims=True)
        deg_inv = pl.reciprocal(jnp.maximum(deg, 1.0), approx=True)
        a_norm = a * deg_inv

        # Static, sublane-aligned views into the packed weight/bias slabs.
        w1 = w_ref[o_w1:o_w1 + 2 * in_dim, :]
        w2 = w_ref[o_w2:o_w2 + 2 * H, :]
        w3 = w_ref[o_w3:o_w3 + 2 * H, :]
        wf = w_ref[o_wf:o_wf + 2 * H, :]
        wp = w_ref[o_wp:o_wp + 2 * H, :]
        wpred = w_ref[o_pred:o_pred + FH, :]
        bias = b_ref[...]                                    # (8, wcols)
        b1, b2, b3, bf, bp, bpred = (bias[0:1], bias[1:2], bias[2:3],
                                     bias[3:4], bias[4:5], bias[5:6])

        def sage(h, w, b, relu):
            # GraphSage(mean): ONE fused MXU matmul for the self+neighbour
            # linear — cat([h, mean_neigh(h)], -1) @ W + b; L2-normalize; relu.
            neigh = jnp.dot(a_norm, h, preferred_element_type=jnp.float32)
            hz = jnp.concatenate([h, neigh], axis=-1)
            z = jnp.dot(hz, w, preferred_element_type=jnp.float32) + b
            sumsq = jnp.sum(z * z, axis=-1, keepdims=True)
            # == z / max(||z||_2, 1e-12)  (F.normalize) via EUP rsqrt
            z = z * lax.rsqrt(jnp.maximum(sumsq, 1e-24))
            if relu:
                z = jnp.maximum(z, 0.0)
            return z

        # gc_before_pool (eval-mode BN of layers 1/2 folded into the NEXT
        # layer's fused weight host-side — exact for default running stats).
        h1 = sage(h0_ref[...], w1, b1, True)
        h2 = sage(h1, w2, b2, True)
        g_emb = sage(h2, w3, b3, False)                      # (N, H)

        # readout = dgl.sum_nodes(g, 'h').  Membership built from iota; graph
        # rows padded to Bp so the output slab needs no sublane re-padding.
        node_i = lax.broadcasted_iota(jnp.int32, (Bp, N), 1)
        graph_b = lax.broadcasted_iota(jnp.int32, (Bp, N), 0)
        lo = graph_b * npg
        member = jnp.logical_and(node_i >= lo, node_i < lo + npg)
        member = member.astype(jnp.float32)                  # (Bp, N)
        readout_sum = jnp.dot(member, g_emb, preferred_element_type=jnp.float32)

        # first_diffpool_layer: feature / assignment SAGE heads (relu, no BN).
        feat = sage(g_emb, wf, bf, True)                     # (N, H)
        # Pool weight/bias were zero-padded to H cols, so padded output cols
        # are exact zeros and do not perturb the l2-norm; slice to (N, C).
        assign = sage(g_emb, wp, bp, True)[:, 0:C]           # (N, C)

        # Block-diagonal assignment mask (N, C): one tiny matmul of two iota
        # membership matrices (node-in-graph x cluster-in-graph).
        ni2 = lax.broadcasted_iota(jnp.int32, (N, Bp), 0)
        gb2 = lax.broadcasted_iota(jnp.int32, (N, Bp), 1)
        lo2 = gb2 * npg
        row_memb = jnp.logical_and(ni2 >= lo2, ni2 < lo2 + npg).astype(jnp.float32)
        ci = lax.broadcasted_iota(jnp.int32, (Bp, C), 1)
        gb3 = lax.broadcasted_iota(jnp.int32, (Bp, C), 0)
        lo3 = gb3 * n_a
        col_memb = jnp.logical_and(ci >= lo3, ci < lo3 + n_a).astype(jnp.float32)
        mask = jnp.dot(row_memb, col_memb, preferred_element_type=jnp.float32)

        # DGL masked_softmax (memory_efficient=False branch).
        logits = assign * mask
        m = jnp.max(logits, axis=-1, keepdims=True)
        e = jnp.exp(logits - m)
        s = e * pl.reciprocal(jnp.sum(e, axis=-1, keepdims=True), approx=True)
        s = s * mask
        s = s * pl.reciprocal(jnp.sum(s, axis=-1, keepdims=True) + 1e-13,
                              approx=True)                   # (N, C)

        # Pooled features / adjacency — transpose S once, reuse twice.
        s_t = jnp.transpose(s)                               # (C, N)
        h_pool = jnp.dot(s_t, feat, preferred_element_type=jnp.float32)   # (C, H)
        adj_pool = jnp.dot(
            s_t, jnp.dot(a, s, preferred_element_type=jnp.float32),
            preferred_element_type=jnp.float32)              # (C, C)

        # Prediction head: ypred = reshape(h_pool, (B, n_a*H)) @ W_pred + b.
        # Collapsed into TWO matmuls (was an n_a-iteration loop of 16 tiny
        # matmuls):  X[r, j*H+d] = h_pool[r, d] iff (r mod n_a) == j,
        #            readout_flat = col_memb @ X,  ypred = readout_flat @ Wp.
        h_tiled = jnp.concatenate([h_pool] * n_a, axis=-1)   # (C, FH)
        r_i = lax.broadcasted_iota(jnp.int32, (C, FH), 0)
        c_i = lax.broadcasted_iota(jnp.int32, (C, FH), 1)
        fm = jnp.zeros((C, FH), jnp.float32)
        for b_idx in range(B):      # unrolled at trace time; compares/mul only
            lo4 = (r_i - b_idx * n_a) * H
            fm = fm + jnp.logical_and(c_i >= lo4,
                                      c_i < lo4 + H).astype(jnp.float32)
        readout_flat = jnp.dot(col_memb, h_tiled * fm,
                               preferred_element_type=jnp.float32)   # (Bp, FH)
        ypred = jnp.dot(readout_flat, wpred,
                        preferred_element_type=jnp.float32) + bpred  # (Bp, wcols)

        # Single lane-dense, unmasked full-tile store: every piece is already a
        # multiple of 8 rows; pad lanes to 128 in registers and stack once.
        def pad_lanes(x):
            r, c = x.shape
            if c == slab_cols:
                return x
            return jnp.concatenate(
                [x, jnp.zeros((r, slab_cols - c), jnp.float32)], axis=-1)

        out_ref[...] = jnp.concatenate(
            [pad_lanes(h_pool),            # rows [0, C)
             pad_lanes(adj_pool),          # rows [C, 2C)
             pad_lanes(readout_sum),       # rows [2C, 2C+Bp)
             pad_lanes(ypred)],            # rows [2C+Bp, 2C+2Bp)
            axis=0)

    return kernel


# ----------------------------- model forward ---------------------------------

def diffpool_forward(h0, adj, params, *, batch_size, nodes_per_graph,
                     assign_num, hidden_dim, n_classes):
    """Full DiffPool forward (num_pool=1, cat=False, num_aggs=1), fused."""
    B, npg, n_a, H = batch_size, nodes_per_graph, assign_num, hidden_dim
    N = B * npg
    C = B * n_a
    Bp = _round_up(B, 8)
    in_dim = h0.shape[1]
    assert C <= H and n_classes <= H, "packed slab assumes out-widths <= hidden"
    assert C % 8 == 0, "pooled-cluster count must be sublane aligned"

    wcols = H
    slab_cols = _round_up(max(H, C, n_classes), 128)
    slab_rows = 2 * C + 2 * Bp

    # Pack the 17 tiny weight/bias tensors into TWO lane-dense slabs so the
    # kernel takes 4 input DMAs (h0, adj, W-slab, b-slab) instead of 19.
    (w1, b1), (w2, b2), (w3, b3) = params["gc_before"]
    (wf, bf) = params["feat_gc"]
    (wp, bp) = params["pool_gc"]
    w_slab, w_offsets = _pack_rows([w1, w2, w3, wf, wp, params["pred_w"]], wcols)
    b_slab = jnp.zeros((8, wcols), jnp.float32)
    for i, b in enumerate([b1, b2, b3, bf, bp, params["pred_b"]]):
        b_slab = b_slab.at[i, :b.shape[-1]].set(b.reshape(-1))

    args = (h0, adj, w_slab, b_slab)
    flops, transcendentals = _estimate_cost(N, in_dim, H, C, B, n_classes, n_a)
    bytes_accessed = sum(int(x.size) * 4 for x in args) + slab_rows * slab_cols * 4

    kernel = make_fused_diffpool_kernel(
        batch_size=B, nodes_per_graph=npg, assign_num=n_a, in_dim=in_dim,
        hidden_dim=H, n_classes=n_classes, w_offsets=w_offsets,
        slab_cols=slab_cols)

    # NOTE: the whole problem (<1 MiB) is VMEM-resident; the 4 MiB cap is
    # generous headroom and documents the budget to re-derive on v7x (64 MiB
    # physical VMEM) when scaling up.
    # TODO(synk): at realistic superpixel sizes switch to grid=(B,) with a
    # "parallel" batch axis and a block-diagonal (B, npg, npg) adjacency layout
    # so per-graph tiles stay under VMEM and both v7x TensorCores are used.
    slab = pl.pallas_call(
        kernel,
        out_shape=jax.ShapeDtypeStruct((slab_rows, slab_cols), jnp.float32),
        in_specs=[_vmem()] * len(args),
        out_specs=_vmem(),
        compiler_params=pltpu.CompilerParams(vmem_limit_bytes=4 * 1024 * 1024),
        cost_estimate=pl.CostEstimate(flops=flops,
                                      transcendentals=transcendentals,
                                      bytes_accessed=bytes_accessed),
    )(*args)

    # Unpack the lane-dense slab (cheap JAX glue).
    h_pool = slab[0:C, 0:H]                                   # (C, H)
    adj_pool = slab[C:2 * C, 0:C]                             # (C, C)
    readout_sum = slab[2 * C:2 * C + B, 0:H]                  # (B, H)
    ypred = slab[2 * C + Bp:2 * C + Bp + B, 0:n_classes]      # (B, n_classes)

    # batch2tensor glue: block-diag (B*n_a, ...) -> (B, n_a, ...)
    h_t = h_pool.reshape(B, n_a, H)
    readout = h_t.reshape(B, n_a * H)
    adj_r = adj_pool.reshape(B, n_a, B, n_a)
    adj_t = jnp.stack([adj_r[i, :, i, :] for i in range(B)], axis=0)

    return ypred, readout, readout_sum, adj_t


# ----------------------------- parameter setup -------------------------------

GAIN_RELU = math.sqrt(2.0)
# Eval-mode BatchNorm1d with default running stats (mean=0, var=1, gamma=1,
# beta=0) is a constant scale 1/sqrt(1+eps); folded into the next layer's
# weights (exact for default stats; trained stats would also need a bias fold).
BN_FOLD = 1.0 / math.sqrt(1.0 + 1e-5)


def xavier_uniform(key, out_feats, in_feats, gain=GAIN_RELU):
    bound = gain * math.sqrt(6.0 / (in_feats + out_feats))
    return jax.random.uniform(key, (out_feats, in_feats), jnp.float32, -bound, bound)


def make_sage_params(key, in_feats, out_feats, scale=1.0):
    # PyTorch: nn.Linear(2*in_feats, out_feats); xavier_uniform_(gain=relu),
    # bias=0.  Returned pre-transposed as ONE fused (2*in, out) matrix so the
    # kernel's cat([h, neigh], -1) @ W matches torch's cat((h, c), 1) @ W.T.
    w = xavier_uniform(key, out_feats, 2 * in_feats)          # (out, 2*in)
    w_fused = jnp.transpose(w) * scale                        # (2*in, out)
    b = jnp.zeros((1, out_feats), jnp.float32)
    return w_fused, b


# ----------------------------- main -------------------------------------------

if __name__ == "__main__":
    # net_params
    batch_size = 2
    nodes_per_graph = 12
    in_dim = 4
    hidden_dim = 32
    n_classes = 5
    assign_num = 8                    # pooled clusters per graph
    assign_dim = assign_num * batch_size

    N = batch_size * nodes_per_graph
    key = jax.random.PRNGKey(0)
    k_feat, k_adj, k1, k2, k3, k4, k5, k6 = jax.random.split(key, 8)

    # node features
    h0 = jax.random.normal(k_feat, (N, in_dim), jnp.float32)

    # block-diagonal symmetric adjacency with self-loops (superpixel-graph-like)
    adj = jnp.zeros((N, N), jnp.float32)
    adj_keys = jax.random.split(k_adj, batch_size)
    for g_idx in range(batch_size):
        up = (jax.random.uniform(adj_keys[g_idx],
                                 (nodes_per_graph, nodes_per_graph)) < 0.3)
        up = jnp.triu(up.astype(jnp.float32), k=1)
        a_g = up + up.T + jnp.eye(nodes_per_graph, dtype=jnp.float32)
        s = g_idx * nodes_per_graph
        adj = adj.at[s:s + nodes_per_graph, s:s + nodes_per_graph].set(a_g)

    # parameters (deterministic xavier-uniform, gain=sqrt(2), biases=0)
    params = {
        "gc_before": [
            make_sage_params(k1, in_dim, hidden_dim),
            # BN after layer 1 folded into layer 2's weights:
            make_sage_params(k2, hidden_dim, hidden_dim, scale=BN_FOLD),
            # BN after layer 2 folded into layer 3's weights:
            make_sage_params(k3, hidden_dim, hidden_dim, scale=BN_FOLD),
        ],
        "feat_gc": make_sage_params(k4, hidden_dim, hidden_dim),
        "pool_gc": make_sage_params(k5, hidden_dim, assign_dim),
        # pred_layer: nn.Linear(hidden_dim * assign_num, n_classes)
        "pred_w": jnp.transpose(
            xavier_uniform(k6, n_classes, hidden_dim * assign_num)),  # (256, 5)
        "pred_b": jnp.zeros((1, n_classes), jnp.float32),
    }

    ypred, readout, readout_sum, adj_t = diffpool_forward(
        h0, adj, params,
        batch_size=batch_size, nodes_per_graph=nodes_per_graph,
        assign_num=assign_num, hidden_dim=hidden_dim, n_classes=n_classes)

    jax.block_until_ready((ypred, readout, readout_sum, adj_t))
    assert ypred.shape == (batch_size, n_classes)
    assert readout.shape == (batch_size, assign_num * hidden_dim)
    assert readout_sum.shape == (batch_size, hidden_dim)
    assert adj_t.shape == (batch_size, assign_num, assign_num)
    # TODO(synk): BatchedDiffPool / BatchedGraphSAGE "after pool" loop omitted —
    # the reference forces num_pool=1 (`pool_ratio` is undefined otherwise), so
    # that loop never executes.
    print("KERNEL_OK")
</pallas_src>

<mosaic_0001>
module attributes {stable_mosaic.version = 11 : i64} {
  func.func @kernel(%arg0: memref<24x4xf32, #tpu.memory_space<vmem>>, %arg1: memref<24x24xf32, #tpu.memory_space<vmem>>, %arg2: memref<520x32xf32, #tpu.memory_space<vmem>>, %arg3: memref<8x32xf32, #tpu.memory_space<vmem>>, %arg4: memref<48x128xf32, #tpu.memory_space<vmem>>) attributes {dimension_semantics = [], scalar_prefetch = 0 : i64, scratch_operands = 0 : i64, tpu.core_type = #tpu.core_type<tc>} {
    %c0 = arith.constant 0 : index
    %c0_0 = arith.constant 0 : index
    %0 = vector.load %arg1[%c0, %c0_0] : memref<24x24xf32, #tpu.memory_space<vmem>>, vector<24x24xf32>
    %cst = arith.constant dense<0.000000e+00> : vector<24xf32>
    %1 = vector.multi_reduction <add>, %0, %cst [1] : vector<24x24xf32> to vector<24xf32>
    %2 = vector.shape_cast %1 : vector<24xf32> to vector<24x1xf32>
    %cst_1 = arith.constant 1.000000e+00 : f32
    %3 = vector.broadcast %cst_1 : f32 to vector<24x1xf32>
    %4 = arith.maximumf %2, %3 : vector<24x1xf32>
    %5 = tpu.reciprocal %4 {approx = true} : vector<24x1xf32> -> vector<24x1xf32>
    %6 = vector.broadcast %5 : vector<24x1xf32> to vector<24x24xf32>
    %7 = arith.mulf %0, %6 : vector<24x24xf32>
    %c0_2 = arith.constant 0 : index
    %c0_3 = arith.constant 0 : index
    %8 = vector.load %arg2[%c0_2, %c0_3] : memref<520x32xf32, #tpu.memory_space<vmem>>, vector<8x32xf32>
    %c8 = arith.constant 8 : index
    %c0_4 = arith.constant 0 : index
    %9 = vector.load %arg2[%c8, %c0_4] : memref<520x32xf32, #tpu.memory_space<vmem>>, vector<64x32xf32>
    %c72 = arith.constant 72 : index
    %c0_5 = arith.constant 0 : index
    %10 = vector.load %arg2[%c72, %c0_5] : memref<520x32xf32, #tpu.memory_space<vmem>>, vector<64x32xf32>
    %c136 = arith.constant 136 : index
    %c0_6 = arith.constant 0 : index
    %11 = vector.load %arg2[%c136, %c0_6] : memref<520x32xf32, #tpu.memory_space<vmem>>, vector<64x32xf32>
    %c200 = arith.constant 200 : index
    %c0_7 = arith.constant 0 : index
    %12 = vector.load %arg2[%c200, %c0_7] : memref<520x32xf32, #tpu.memory_space<vmem>>, vector<64x32xf32>
    %c264 = arith.constant 264 : index
    %c0_8 = arith.constant 0 : index
    %13 = vector.load %arg2[%c264, %c0_8] : memref<520x32xf32, #tpu.memory_space<vmem>>, vector<256x32xf32>
    %c0_9 = arith.constant 0 : index
    %c0_10 = arith.constant 0 : index
    %14 = vector.load %arg3[%c0_9, %c0_10] : memref<8x32xf32, #tpu.memory_space<vmem>>, vector<8x32xf32>
    %15 = vector.extract_strided_slice %14 {offsets = [0, 0], sizes = [1, 32], strides = [1, 1]} : vector<8x32xf32> to vector<1x32xf32>
    %16 = vector.extract_strided_slice %14 {offsets = [1, 0], sizes = [1, 32], strides = [1, 1]} : vector<8x32xf32> to vector<1x32xf32>
    %17 = vector.extract_strided_slice %14 {offsets = [2, 0], sizes = [1, 32], strides = [1, 1]} : vector<8x32xf32> to vector<1x32xf32>
    %18 = vector.extract_strided_slice %14 {offsets = [3, 0], sizes = [1, 32], strides = [1, 1]} : vector<8x32xf32> to vector<1x32xf32>
    %19 = vector.extract_strided_slice %14 {offsets = [4, 0], sizes = [1, 32], strides = [1, 1]} : vector<8x32xf32> to vector<1x32xf32>
    %20 = vector.extract_strided_slice %14 {offsets = [5, 0], sizes = [1, 32], strides = [1, 1]} : vector<8x32xf32> to vector<1x32xf32>
    %c0_11 = arith.constant 0 : index
    %c0_12 = arith.constant 0 : index
    %21 = vector.load %arg0[%c0_11, %c0_12] : memref<24x4xf32, #tpu.memory_space<vmem>>, vector<24x4xf32>
    %cst_13 = arith.constant dense<0.000000e+00> : vector<24x4xf32>
    %22 = tpu.matmul %7, %21, %cst_13 {dimension_numbers = #tpu.dot_dimension_numbers<[1], [0], [0], [1], [0, 0, 1, 1], [], []>} : vector<24x24xf32>, vector<24x4xf32>, vector<24x4xf32> -> vector<24x4xf32>
    %23 = tpu.concatenate %21, %22 in 1 : vector<24x4xf32>, vector<24x4xf32> -> vector<24x8xf32>
    %cst_14 = arith.constant dense<0.000000e+00> : vector<24x32xf32>
    %24 = tpu.matmul %23, %8, %cst_14 {dimension_numbers = #tpu.dot_dimension_numbers<[1], [0], [0], [1], [0, 0, 1, 1], [], []>} : vector<24x8xf32>, vector<8x32xf32>, vector<24x32xf32> -> vector<24x32xf32>
    %25 = vector.broadcast %15 : vector<1x32xf32> to vector<24x32xf32>
    %26 = arith.addf %24, %25 : vector<24x32xf32>
    %27 = arith.mulf %26, %26 : vector<24x32xf32>
    %cst_15 = arith.constant dense<0.000000e+00> : vector<24xf32>
    %28 = vector.multi_reduction <add>, %27, %cst_15 [1] : vector<24x32xf32> to vector<24xf32>
    %29 = vector.shape_cast %28 : vector<24xf32> to vector<24x1xf32>
    %cst_16 = arith.constant 1.000000e-24 : f32
    %30 = vector.broadcast %cst_16 : f32 to vector<24x1xf32>
    %31 = arith.maximumf %29, %30 : vector<24x1xf32>
    %32 = math.rsqrt %31 : vector<24x1xf32>
    %33 = vector.broadcast %32 : vector<24x1xf32> to vector<24x32xf32>
    %34 = arith.mulf %26, %33 : vector<24x32xf32>
    %cst_17 = arith.constant 0.000000e+00 : f32
    %35 = vector.broadcast %cst_17 : f32 to vector<24x32xf32>
    %36 = arith.maximumf %34, %35 : vector<24x32xf32>
    %cst_18 = arith.constant dense<0.000000e+00> : vector<24x32xf32>
    %37 = tpu.matmul %7, %36, %cst_18 {dimension_numbers = #tpu.dot_dimension_numbers<[1], [0], [0], [1], [0, 0, 1, 1], [], []>} : vector<24x24xf32>, vector<24x32xf32>, vector<24x32xf32> -> vector<24x32xf32>
    %38 = tpu.concatenate %36, %37 in 1 : vector<24x32xf32>, vector<24x32xf32> -> vector<24x64xf32>
    %cst_19 = arith.constant dense<0.000000e+00> : vector<24x32xf32>
    %39 = tpu.matmul %38, %9, %cst_19 {dimension_numbers = #tpu.dot_dimension_numbers<[1], [0], [0], [1], [0, 0, 1, 1], [], []>} : vector<24x64xf32>, vector<64x32xf32>, vector<24x32xf32> -> vector<24x32xf32>
    %40 = vector.broadcast %16 : vector<1x32xf32> to vector<24x32xf32>
    %41 = arith.addf %39, %40 : vector<24x32xf32>
    %42 = arith.mulf %41, %41 : vector<24x32xf32>
    %cst_20 = arith.constant dense<0.000000e+00> : vector<24xf32>
    %43 = vector.multi_reduction <add>, %42, %cst_20 [1] : vector<24x32xf32> to vector<24xf32>
    %44 = vector.shape_cast %43 : vector<24xf32> to vector<24x1xf32>
    %cst_21 = arith.constant 1.000000e-24 : f32
    %45 = vector.broadcast %cst_21 : f32 to vector<24x1xf32>
    %46 = arith.maximumf %44, %45 : vector<24x1xf32>
    %47 = math.rsqrt %46 : vector<24x1xf32>
    %48 = vector.broadcast %47 : vector<24x1xf32> to vector<24x32xf32>
    %49 = arith.mulf %41, %48 : vector<24x32xf32>
    %cst_22 = arith.constant 0.000000e+00 : f32
    %50 = vector.broadcast %cst_22 : f32 to vector<24x32xf32>
    %51 = arith.maximumf %49, %50 : vector<24x32xf32>
    %cst_23 = arith.constant dense<0.000000e+00> : vector<24x32xf32>
    %52 = tpu.matmul %7, %51, %cst_23 {dimension_numbers = #tpu.dot_dimension_numbers<[1], [0], [0], [1], [0, 0, 1, 1], [], []>} : vector<24x24xf32>, vector<24x32xf32>, vector<24x32xf32> -> vector<24x32xf32>
    %53 = tpu.concatenate %51, %52 in 1 : vector<24x32xf32>, vector<24x32xf32> -> vector<24x64xf32>
    %cst_24 = arith.constant dense<0.000000e+00> : vector<24x32xf32>
    %54 = tpu.matmul %53, %10, %cst_24 {dimension_numbers = #tpu.dot_dimension_numbers<[1], [0], [0], [1], [0, 0, 1, 1], [], []>} : vector<24x64xf32>, vector<64x32xf32>, vector<24x32xf32> -> vector<24x32xf32>
    %55 = vector.broadcast %17 : vector<1x32xf32> to vector<24x32xf32>
    %56 = arith.addf %54, %55 : vector<24x32xf32>
    %57 = arith.mulf %56, %56 : vector<24x32xf32>
    %cst_25 = arith.constant dense<0.000000e+00> : vector<24xf32>
    %58 = vector.multi_reduction <add>, %57, %cst_25 [1] : vector<24x32xf32> to vector<24xf32>
    %59 = vector.shape_cast %58 : vector<24xf32> to vector<24x1xf32>
    %cst_26 = arith.constant 1.000000e-24 : f32
    %60 = vector.broadcast %cst_26 : f32 to vector<24x1xf32>
    %61 = arith.maximumf %59, %60 : vector<24x1xf32>
    %62 = math.rsqrt %61 : vector<24x1xf32>
    %63 = vector.broadcast %62 : vector<24x1xf32> to vector<24x32xf32>
    %64 = arith.mulf %56, %63 : vector<24x32xf32>
    %65 = tpu.iota {dimensions = array<i32: 1>} : vector<8x24xi32>
    %66 = tpu.iota {dimensions = array<i32: 0>} : vector<8x24xi32>
    %c12_i32 = arith.constant 12 : i32
    %67 = vector.broadcast %c12_i32 : i32 to vector<8x24xi32>
    %68 = arith.muli %66, %67 : vector<8x24xi32>
    %69 = arith.cmpi sge, %65, %68 : vector<8x24xi32>
    %c12_i32_27 = arith.constant 12 : i32
    %70 = vector.broadcast %c12_i32_27 : i32 to vector<8x24xi32>
    %71 = arith.addi %68, %70 : vector<8x24xi32>
    %72 = arith.cmpi slt, %65, %71 : vector<8x24xi32>
    %73 = arith.andi %69, %72 : vector<8x24xi1>
    %74 = arith.extui %73 : vector<8x24xi1> to vector<8x24xi32>
    %75 = arith.sitofp %74 : vector<8x24xi32> to vector<8x24xf32>
    %cst_28 = arith.constant dense<0.000000e+00> : vector<8x32xf32>
    %76 = tpu.matmul %75, %64, %cst_28 {dimension_numbers = #tpu.dot_dimension_numbers<[1], [0], [0], [1], [0, 0, 1, 1], [], []>} : vector<8x24xf32>, vector<24x32xf32>, vector<8x32xf32> -> vector<8x32xf32>
    %cst_29 = arith.constant dense<0.000000e+00> : vector<24x32xf32>
    %77 = tpu.matmul %7, %64, %cst_29 {dimension_numbers = #tpu.dot_dimension_numbers<[1], [0], [0], [1], [0, 0, 1, 1], [], []>} : vector<24x24xf32>, vector<24x32xf32>, vector<24x32xf32> -> vector<24x32xf32>
    %78 = tpu.concatenate %64, %77 in 1 : vector<24x32xf32>, vector<24x32xf32> -> vector<24x64xf32>
    %cst_30 = arith.constant dense<0.000000e+00> : vector<24x32xf32>
    %79 = tpu.matmul %78, %11, %cst_30 {dimension_numbers = #tpu.dot_dimension_numbers<[1], [0], [0], [1], [0, 0, 1, 1], [], []>} : vector<24x64xf32>, vector<64x32xf32>, vector<24x32xf32> -> vector<24x32xf32>
    %80 = vector.broadcast %18 : vector<1x32xf32> to vector<24x32xf32>
    %81 = arith.addf %79, %80 : vector<24x32xf32>
    %82 = arith.mulf %81, %81 : vector<24x32xf32>
    %cst_31 = arith.constant dense<0.000000e+00> : vector<24xf32>
    %83 = vector.multi_reduction <add>, %82, %cst_31 [1] : vector<24x32xf32> to vector<24xf32>
    %84 = vector.shape_cast %83 : vector<24xf32> to vector<24x1xf32>
    %cst_32 = arith.constant 1.000000e-24 : f32
    %85 = vector.broadcast %cst_32 : f32 to vector<24x1xf32>
    %86 = arith.maximumf %84, %85 : vector<24x1xf32>
    %87 = math.rsqrt %86 : vector<24x1xf32>
    %88 = vector.broadcast %87 : vector<24x1xf32> to vector<24x32xf32>
    %89 = arith.mulf %81, %88 : vector<24x32xf32>
    %cst_33 = arith.constant 0.000000e+00 : f32
    %90 = vector.broadcast %cst_33 : f32 to vector<24x32xf32>
    %91 = arith.maximumf %89, %90 : vector<24x32xf32>
    %cst_34 = arith.constant dense<0.000000e+00> : vector<24x32xf32>
    %92 = tpu.matmul %7, %64, %cst_34 {dimension_numbers = #tpu.dot_dimension_numbers<[1], [0], [0], [1], [0, 0, 1, 1], [], []>} : vector<24x24xf32>, vector<24x32xf32>, vector<24x32xf32> -> vector<24x32xf32>
    %93 = tpu.concatenate %64, %92 in 1 : vector<24x32xf32>, vector<24x32xf32> -> vector<24x64xf32>
    %cst_35 = arith.constant dense<0.000000e+00> : vector<24x32xf32>
    %94 = tpu.matmul %93, %12, %cst_35 {dimension_numbers = #tpu.dot_dimension_numbers<[1], [0], [0], [1], [0, 0, 1, 1], [], []>} : vector<24x64xf32>, vector<64x32xf32>, vector<24x32xf32> -> vector<24x32xf32>
    %95 = vector.broadcast %19 : vector<1x32xf32> to vector<24x32xf32>
    %96 = arith.addf %94, %95 : vector<24x32xf32>
    %97 = arith.mulf %96, %96 : vector<24x32xf32>
    %cst_36 = arith.constant dense<0.000000e+00> : vector<24xf32>
    %98 = vector.multi_reduction <add>, %97, %cst_36 [1] : vector<24x32xf32> to vector<24xf32>
    %99 = vector.shape_cast %98 : vector<24xf32> to vector<24x1xf32>
    %cst_37 = arith.constant 1.000000e-24 : f32
    %100 = vector.broadcast %cst_37 : f32 to vector<24x1xf32>
    %101 = arith.maximumf %99, %100 : vector<24x1xf32>
    %102 = math.rsqrt %101 : vector<24x1xf32>
    %103 = vector.broadcast %102 : vector<24x1xf32> to vector<24x32xf32>
    %104 = arith.mulf %96, %103 : vector<24x32xf32>
    %cst_38 = arith.constant 0.000000e+00 : f32
    %105 = vector.broadcast %cst_38 : f32 to vector<24x32xf32>
    %106 = arith.maximumf %104, %105 : vector<24x32xf32>
    %107 = vector.extract_strided_slice %106 {offsets = [0, 0], sizes = [24, 16], strides = [1, 1]} : vector<24x32xf32> to vector<24x16xf32>
    %108 = tpu.iota {dimensions = array<i32: 0>} : vector<24x8xi32>
    %109 = tpu.iota {dimensions = array<i32: 1>} : vector<24x8xi32>
    %c12_i32_39 = arith.constant 12 : i32
    %110 = vector.broadcast %c12_i32_39 : i32 to vector<24x8xi32>
    %111 = arith.muli %109, %110 : vector<24x8xi32>
    %112 = arith.cmpi sge, %108, %111 : vector<24x8xi32>
    %c12_i32_40 = arith.constant 12 : i32
    %113 = vector.broadcast %c12_i32_40 : i32 to vector<24x8xi32>
    %114 = arith.addi %111, %113 : vector<24x8xi32>
    %115 = arith.cmpi slt, %108, %114 : vector<24x8xi32>
    %116 = arith.andi %112, %115 : vector<24x8xi1>
    %117 = arith.extui %116 : vector<24x8xi1> to vector<24x8xi32>
    %118 = arith.sitofp %117 : vector<24x8xi32> to vector<24x8xf32>
    %119 = tpu.iota {dimensions = array<i32: 1>} : vector<8x16xi32>
    %120 = tpu.iota {dimensions = array<i32: 0>} : vector<8x16xi32>
    %c8_i32 = arith.constant 8 : i32
    %121 = vector.broadcast %c8_i32 : i32 to vector<8x16xi32>
    %122 = arith.muli %120, %121 : vector<8x16xi32>
    %123 = arith.cmpi sge, %119, %122 : vector<8x16xi32>
    %c8_i32_41 = arith.constant 8 : i32
    %124 = vector.broadcast %c8_i32_41 : i32 to vector<8x16xi32>
    %125 = arith.addi %122, %124 : vector<8x16xi32>
    %126 = arith.cmpi slt, %119, %125 : vector<8x16xi32>
    %127 = arith.andi %123, %126 : vector<8x16xi1>
    %128 = arith.extui %127 : vector<8x16xi1> to vector<8x16xi32>
    %129 = arith.sitofp %128 : vector<8x16xi32> to vector<8x16xf32>
    %cst_42 = arith.constant dense<0.000000e+00> : vector<24x16xf32>
    %130 = tpu.matmul %118, %129, %cst_42 {dimension_numbers = #tpu.dot_dimension_numbers<[1], [0], [0], [1], [0, 0, 1, 1], [], []>} : vector<24x8xf32>, vector<8x16xf32>, vector<24x16xf32> -> vector<24x16xf32>
    %131 = arith.mulf %107, %130 : vector<24x16xf32>
    %cst_43 = arith.constant dense<0xFF800000> : vector<24xf32>
    %132 = vector.multi_reduction <maximumf>, %131, %cst_43 [1] : vector<24x16xf32> to vector<24xf32>
    %133 = vector.shape_cast %132 : vector<24xf32> to vector<24x1xf32>
    %134 = vector.broadcast %133 : vector<24x1xf32> to vector<24x16xf32>
    %135 = arith.subf %131, %134 : vector<24x16xf32>
    %136 = math.exp %135 : vector<24x16xf32>
    %cst_44 = arith.constant dense<0.000000e+00> : vector<24xf32>
    %137 = vector.multi_reduction <add>, %136, %cst_44 [1] : vector<24x16xf32> to vector<24xf32>
    %138 = vector.shape_cast %137 : vector<24xf32> to vector<24x1xf32>
    %139 = tpu.reciprocal %138 {approx = true} : vector<24x1xf32> -> vector<24x1xf32>
    %140 = vector.broadcast %139 : vector<24x1xf32> to vector<24x16xf32>
    %141 = arith.mulf %136, %140 : vector<24x16xf32>
    %142 = arith.mulf %141, %130 : vector<24x16xf32>
    %cst_45 = arith.constant dense<0.000000e+00> : vector<24xf32>
    %143 = vector.multi_reduction <add>, %142, %cst_45 [1] : vector<24x16xf32> to vector<24xf32>
    %144 = vector.shape_cast %143 : vector<24xf32> to vector<24x1xf32>
    %cst_46 = arith.constant 9.99999982E-14 : f32
    %145 = vector.broadcast %cst_46 : f32 to vector<24x1xf32>
    %146 = arith.addf %144, %145 : vector<24x1xf32>
    %147 = tpu.reciprocal %146 {approx = true} : vector<24x1xf32> -> vector<24x1xf32>
    %148 = vector.broadcast %147 : vector<24x1xf32> to vector<24x16xf32>
    %149 = arith.mulf %142, %148 : vector<24x16xf32>
    %150 = tpu.transpose %149, [1, 0] : vector<24x16xf32> -> vector<16x24xf32>
    %cst_47 = arith.constant dense<0.000000e+00> : vector<16x32xf32>
    %151 = tpu.matmul %150, %91, %cst_47 {dimension_numbers = #tpu.dot_dimension_numbers<[1], [0], [0], [1], [0, 0, 1, 1], [], []>} : vector<16x24xf32>, vector<24x32xf32>, vector<16x32xf32> -> vector<16x32xf32>
    %cst_48 = arith.constant dense<0.000000e+00> : vector<24x16xf32>
    %152 = tpu.matmul %0, %149, %cst_48 {dimension_numbers = #tpu.dot_dimension_numbers<[1], [0], [0], [1], [0, 0, 1, 1], [], []>} : vector<24x24xf32>, vector<24x16xf32>, vector<24x16xf32> -> vector<24x16xf32>
    %cst_49 = arith.constant dense<0.000000e+00> : vector<16x16xf32>
    %153 = tpu.matmul %150, %152, %cst_49 {dimension_numbers = #tpu.dot_dimension_numbers<[1], [0], [0], [1], [0, 0, 1, 1], [], []>} : vector<16x24xf32>, vector<24x16xf32>, vector<16x16xf32> -> vector<16x16xf32>
    %154 = tpu.concatenate %151, %151, %151, %151, %151, %151, %151, %151 in 1 : vector<16x32xf32>, vector<16x32xf32>, vector<16x32xf32>, vector<16x32xf32>, vector<16x32xf32>, vector<16x32xf32>, vector<16x32xf32>, vector<16x32xf32> -> vector<16x256xf32>
    %155 = tpu.iota {dimensions = array<i32: 0>} : vector<16x256xi32>
    %156 = tpu.iota {dimensions = array<i32: 1>} : vector<16x256xi32>
    %cst_50 = arith.constant 0.000000e+00 : f32
    %157 = vector.broadcast %cst_50 : f32 to vector<16x256xf32>
    %c0_i32 = arith.constant 0 : i32
    %158 = vector.broadcast %c0_i32 : i32 to vector<16x256xi32>
    %159 = arith.subi %155, %158 : vector<16x256xi32>
    %c32_i32 = arith.constant 32 : i32
    %160 = vector.broadcast %c32_i32 : i32 to vector<16x256xi32>
    %161 = arith.muli %159, %160 : vector<16x256xi32>
    %162 = arith.cmpi sge, %156, %161 : vector<16x256xi32>
    %c32_i32_51 = arith.constant 32 : i32
    %163 = vector.broadcast %c32_i32_51 : i32 to vector<16x256xi32>
    %164 = arith.addi %161, %163 : vector<16x256xi32>
    %165 = arith.cmpi slt, %156, %164 : vector<16x256xi32>
    %166 = arith.andi %162, %165 : vector<16x256xi1>
    %167 = arith.extui %166 : vector<16x256xi1> to vector<16x256xi32>
    %168 = arith.sitofp %167 : vector<16x256xi32> to vector<16x256xf32>
    %169 = arith.addf %157, %168 : vector<16x256xf32>
    %c8_i32_52 = arith.constant 8 : i32
    %170 = vector.broadcast %c8_i32_52 : i32 to vector<16x256xi32>
    %171 = arith.subi %155, %170 : vector<16x256xi32>
    %c32_i32_53 = arith.constant 32 : i32
    %172 = vector.broadcast %c32_i32_53 : i32 to vector<16x256xi32>
    %173 = arith.muli %171, %172 : vector<16x256xi32>
    %174 = arith.cmpi sge, %156, %173 : vector<16x256xi32>
    %c32_i32_54 = arith.constant 32 : i32
    %175 = vector.broadcast %c32_i32_54 : i32 to vector<16x256xi32>
    %176 = arith.addi %173, %175 : vector<16x256xi32>
    %177 = arith.cmpi slt, %156, %176 : vector<16x256xi32>
    %178 = arith.andi %174, %177 : vector<16x256xi1>
    %179 = arith.extui %178 : vector<16x256xi1> to vector<16x256xi32>
    %180 = arith.sitofp %179 : vector<16x256xi32> to vector<16x256xf32>
    %181 = arith.addf %169, %180 : vector<16x256xf32>
    %182 = arith.mulf %154, %181 : vector<16x256xf32>
    %cst_55 = arith.constant dense<0.000000e+00> : vector<8x256xf32>
    %183 = tpu.matmul %129, %182, %cst_55 {dimension_numbers = #tpu.dot_dimension_numbers<[1], [0], [0], [1], [0, 0, 1, 1], [], []>} : vector<8x16xf32>, vector<16x256xf32>, vector<8x256xf32> -> vector<8x256xf32>
    %cst_56 = arith.constant dense<0.000000e+00> : vector<8x32xf32>
    %184 = tpu.matmul %183, %13, %cst_56 {dimension_numbers = #tpu.dot_dimension_numbers<[1], [0], [0], [1], [0, 0, 1, 1], [], []>} : vector<8x256xf32>, vector<256x32xf32>, vector<8x32xf32> -> vector<8x32xf32>
    %185 = vector.broadcast %20 : vector<1x32xf32> to vector<8x32xf32>
    %186 = arith.addf %184, %185 : vector<8x32xf32>
    %cst_57 = arith.constant 0.000000e+00 : f32
    %187 = vector.broadcast %cst_57 : f32 to vector<16x96xf32>
    %188 = tpu.concatenate %151, %187 in 1 : vector<16x32xf32>, vector<16x96xf32> -> vector<16x128xf32>
    %cst_58 = arith.constant 0.000000e+00 : f32
    %189 = vector.broadcast %cst_58 : f32 to vector<16x112xf32>
    %190 = tpu.concatenate %153, %189 in 1 : vector<16x16xf32>, vector<16x112xf32> -> vector<16x128xf32>
    %cst_59 = arith.constant 0.000000e+00 : f32
    %191 = vector.broadcast %cst_59 : f32 to vector<8x96xf32>
    %192 = tpu.concatenate %76, %191 in 1 : vector<8x32xf32>, vector<8x96xf32> -> vector<8x128xf32>
    %cst_60 = arith.constant 0.000000e+00 : f32
    %193 = vector.broadcast %cst_60 : f32 to vector<8x96xf32>
    %194 = tpu.concatenate %186, %193 in 1 : vector<8x32xf32>, vector<8x96xf32> -> vector<8x128xf32>
    %195 = tpu.concatenate %188, %190, %192, %194 in 0 : vector<16x128xf32>, vector<16x128xf32>, vector<8x128xf32>, vector<8x128xf32> -> vector<48x128xf32>
    %c0_61 = arith.constant 0 : index
    %c0_62 = arith.constant 0 : index
    %196 = vector.load %arg4[%c0_61, %c0_62] : memref<48x128xf32, #tpu.memory_space<vmem>>, vector<48x128xf32>
    tpu.vector_store %arg4[%c0_61, %c0_62], %195 {strides = array<i32>} : memref<48x128xf32, #tpu.memory_space<vmem>>, vector<48x128xf32>,
    return
  }
}

</mosaic_0001>

<bundles_post_ra>
// kernel: tpu_custom_call.1
= control target key start
LH: loop header
LB: loop body
LE: loop exit
PB: predicated region body
PF: predicated region fallthrough
CT: control target
= control target key end

     0   :  { %vm21_vm0 = vcmask 195584   ;;  %s1855_s0 = inlined_call_operand.vmem [shape: f32[24,4], index: 0, kind: input, shape index: {}]   ;;  %s1856_s1 = inlined_call_operand.vmem [shape: f32[24,24], index: 1, kind: input, shape index: {}]   ;;  %s1857_s2 = inlined_call_operand.vmem [shape: f32[520,32], index: 2, kind: input, shape index: {}]   ;;  %s1858_s3 = inlined_call_operand.vmem [shape: f32[8,32], index: 3, kind: input, shape index: {}]   ;;  %s1859_s4 = inlined_call_operand.hbm [shape: f32[48,128], index: 4, kind: output, shape index: {}]  }
   0x1   :  { %v18_v0 = vld [vmem:[%s1856_s1] sm:$0xff]  ;;  %v20_v1 = vld [vmem:[%s1856_s1 + $0x10] sm:$0xff] }
   0x2   :  { %v22_v2 = vsel %vm21_vm0, %v18_v0, 0.0  ;;  %v28_v3 = vsel %vm21_vm0, %v20_v1, 0.0 }
   0x3   :  { %9 = vsyncpa [#allocation3], 0  ;;  %23 = vadd.xlane.f32.xlu0 %v22_v2  ;;  %29 = vadd.xlane.f32.xlu1 %v28_v3  ;;  %v19_v4 = vld [vmem:[%s1856_s1 + $0x8] sm:$0xff]  ;;  %v108_v6 = vld [vmem:[%s1855_s0 + $0x10] sm:$0xff]  ;;  %vm156_vm1 = vcmask 31744   ;;  %vm161_vm2 = vcmask 64512  }
   0x4   :  { %v25_v5 = vsel %vm21_vm0, %v19_v4, 0.0  ;;  %131 = vmatpush.msra.mxu0 %v108_v6  ;;  %v107_v7 = vld [vmem:[%s1855_s0 + $0x8] sm:$0xff]  ;;  %v106_v8 = vld [vmem:[%s1855_s0] sm:$0xff]  ;;  %s1327_s0 = smov 4   ;;  %vm200_vm3 = vcmask 261120   ;;  %s1328_s19 = smov 32  }
   0x5   :  { %v40_v24 = vld [vmem:[%s1857_s2] sm:$0xff]  ;;  %vm291_vm13 = vcmask 523264   ;;  %s1332_s24 = smov 96   ;;  %s1333_s7 = smov [#allocation2]  }
   0x6   :  { %132 = vmatpush.msra.mxu0 %v107_v7  ;;  %1225 = vmatpush.msra.mxu1 %v40_v24  ;;  %v1403_v31 = vld [vmem:[%s1858_s3] sm:$0xff]  ;;  %s1158_s8 = sshll.u32 %s1333_s7, 4  ;;  %s1160_s11 = sshll.u32 %s1859_s4, 4  ;;  %s1159_s8 = int_to_ptr.vmem [resolvable:$true] %s1158_s8  ;;  %s1161_s11 = int_to_ptr.hbm [resolvable:$true] %s1160_s11 }
   0x7   :  { %v160_v32 = vperm.slane %v1403_v31, 0  ;;  %s1335_s12 = smov 8  }
   0x8   :  { %133 = vmatpush.msra.mxu0 %v106_v8 }
   0xa   :  { %186 = vmatpush.msrb.mxu0 %v40_v24  ;;  %v42_v24 = vld [vmem:[%s1857_s2 + $0x10] sm:$0xff] }
   0xb   :  { %26 = vadd.xlane.f32.xlu0 %v25_v5 }
  0x76   :  { %v24_v9 = vpop.xlane.xlu0 %23  ;;  %v30_v12 = vpop.xlane.xlu1 %29 }
  0x77   :  { %v31_v10 = vmax.f32 %v24_v9, 1.0  ;;  %v33_v16 = vmax.f32 %v30_v12, 1.0 }
  0x79   :  { %1243 = vrcp.f32 %v31_v10 }
  0x7e   :  { %v27_v11 = vpop.xlane.xlu0 %26 }
  0x7f   :  { %v1244_v13 = vpop.eup %1243  ;;  %v32_v14 = vmax.f32 %v27_v11, 1.0 }
  0x80   :  { %v1382_v15 = vmul.f32 %v1244_v13, %v18_v0 }
  0x81   :  { %1245 = vrcp.f32 %v32_v14  ;;  %v48_v14 = vld [vmem:[%s1857_s2 + $0x40] sm:$0xff] }
  0x82   :  { %1172 = vmatmul.msk.f32.vlgmr.msra.gmra.mxu0 %vm21_vm0, %v1382_v15  ;;  %1247 = vrcp.f32 %v33_v16  ;;  %v47_v16 = vld [vmem:[%s1857_s2 + $0x38] sm:$0xff]  ;;  %1226 = vmatpush.msra.mxu3 %v48_v14 }
  0x84   :  { %1227 = vmatpush.msra.mxu3 %v47_v16 }
  0x87   :  { %v1246_v17 = vpop.eup %1245 }
  0x88   :  { %v1386_v18 = vmul.f32 %v1246_v17, %v19_v4  ;;  %v1248_v19 = vpop.eup %1247  ;;  %v46_v17 = vld [vmem:[%s1857_s2 + $0x30] sm:$0xff] }
  0x89   :  { %v1390_v20 = vmul.f32 %v1248_v19, %v20_v1  ;;  %v45_v19 = vld [vmem:[%s1857_s2 + $0x28] sm:$0xff]  ;;  %1228 = vmatpush.msra.mxu3 %v46_v17 }
  0x8a   :  { %1173 = vmatmul.msk.f32.gmra.mxu0 %vm21_vm0, %v1386_v18 }
  0x8b   :  { %1229 = vmatpush.msra.mxu3 %v45_v19 }
  0x92   :  { %1174 = vmatmul.msk.f32.gmra.mxu0 %vm21_vm0, %v1390_v20 }
  0xff   :  { %v135_v21 = vpop.f32.mrf.mxu0 }
 0x100   :  { %147 = vrot.lane.b32.xlu1 %v135_v21, %s1327_s0  ;;  %v44_v21 = vld [vmem:[%s1857_s2 + $0x20] sm:$0xff] }
 0x101   :  { %1230 = vmatpush.msra.mxu3 %v44_v21 }
 0x107   :  { %v138_v22 = vpop.f32.mrf.mxu0 }
 0x10f   :  { %v141_v23 = vpop.f32.mrf.mxu0 }
 0x110   :  { %151 = vrot.lane.b32.xlu2 %v141_v23, %s1327_s0  ;;  %v43_v23 = vld [vmem:[%s1857_s2 + $0x18] sm:$0xff] }
 0x111   :  { %1231 = vmatpush.msra.mxu3 %v43_v23 }
 0x113   :  { %1232 = vmatpush.msra.mxu3 %v42_v24 }
 0x118   :  { %149 = vrot.lane.b32.xlu2 %v138_v22, %s1327_s0 }
 0x16a   :  { %v152_v25 = vpop.permute.xlu2 %151 }
 0x16b   :  { %v159_v26 = vsel %vm156_vm1, %v108_v6, %v152_v25 }
 0x16c   :  { %1177 = vmatmul.msk.f32.vlgmr.msra.gmra.mxu1 %vm161_vm2, %v159_v26 }
 0x172   :  { %v148_v27 = vpop.permute.xlu1 %147  ;;  %v150_v29 = vpop.permute.xlu2 %149 }
 0x173   :  { %v157_v28 = vsel %vm156_vm1, %v106_v8, %v148_v27  ;;  %v158_v30 = vsel %vm156_vm1, %v107_v7, %v150_v29  ;;  %v41_v27 = vld [vmem:[%s1857_s2 + $0x8] sm:$0xff] }
 0x174   :  { %1175 = vmatmul.msk.f32.vlgmr.msrb.gmra.mxu0 %vm161_vm2, %v157_v28  ;;  %1233 = vmatpush.msra.mxu3 %v41_v27 }
 0x17c   :  { %1176 = vmatmul.msk.f32.gmra.mxu0 %vm161_vm2, %v158_v30 }
 0x1e9   :  { %v194_v33 = vpop.f32.mrf.mxu1 }
 0x1ea   :  { %v195_v34 = vadd.f32 %v194_v33, %v160_v32 }
 0x1ec   :  { %v199_v35 = vmul.f32 %v195_v34, %v195_v34 }
 0x1ee   :  { %v207_v36 = vsel %vm200_vm3, %v199_v35, 0.0  ;;  %v290_v35 = vperm.slane %v1403_v31, 1 }
 0x1ef   :  { %208 = vadd.xlane.f32.xlu0 %v207_v36 }
 0x1f1   :  { %v188_v37 = vpop.f32.mrf.mxu0 }
 0x1f2   :  { %v189_v38 = vadd.f32 %v188_v37, %v160_v32 }
 0x1f4   :  { %v197_v39 = vmul.f32 %v189_v38, %v189_v38 }
 0x1f6   :  { %v201_v40 = vsel %vm200_vm3, %v197_v39, 0.0 }
 0x1f7   :  { %202 = vadd.xlane.f32.xlu0 %v201_v40 }
 0x1f9   :  { %v191_v41 = vpop.f32.mrf.mxu0 }
 0x1fa   :  { %v192_v42 = vadd.f32 %v191_v41, %v160_v32 }
 0x1fc   :  { %v198_v43 = vmul.f32 %v192_v42, %v192_v42 }
 0x1fe   :  { %v204_v44 = vsel %vm200_vm3, %v198_v43, 0.0 }
 0x1ff   :  { %205 = vadd.xlane.f32.xlu2 %v204_v44 }
 0x262   :  { %v209_v45 = vpop.xlane.xlu0 %208 }
 0x263   :  { %v212_v46 = vmax.f32 %v209_v45, 1e-24 }
 0x265   :  { %1249 = vrsqrt.f32 %v212_v46  ;;  %vm239_vm4 = vweird.f32 %v212_v46 }
 0x26a   :  { %v203_v47 = vpop.xlane.xlu0 %202 }
 0x26b   :  { %v1250_v48 = vpop.eup %1249  ;;  %v210_v49 = vmax.f32 %v203_v47, 1e-24 }
 0x26c   :  { %v234_v50 = vmul.f32 %v1250_v48, %v212_v46  ;;  %vm240_vm5 = vweird.f32 %v1250_v48 }
 0x26d   :  { %1251 = vrsqrt.f32 %v210_v49  ;;  %vm241_vm6 = vmor %vm239_vm4, %vm240_vm5  ;;  %vm219_vm8 = vweird.f32 %v210_v49 }
 0x26e   :  { %v235_v51 = vmul.f32 %v1250_v48, %v234_v50 }
 0x270   :  { %v236_v52 = vmul.f32 0.5, %v235_v51 }
 0x272   :  { %v237_v53 = vsub.f32 1.5, %v236_v52  ;;  %v206_v54 = vpop.xlane.xlu2 %205 }
 0x273   :  { %v1252_v55 = vpop.eup %1251  ;;  %v211_v56 = vmax.f32 %v206_v54, 1e-24 }
 0x274   :  { %v214_v57 = vmul.f32 %v1252_v55, %v210_v49  ;;  %v238_v58 = vmul.f32 %v1250_v48, %v237_v53  ;;  %vm220_vm7 = vweird.f32 %v1252_v55 }
 0x275   :  { %1253 = vrsqrt.f32 %v211_v56  ;;  %vm221_vm10 = vmor %vm219_vm8, %vm220_vm7  ;;  %vm229_vm11 = vweird.f32 %v211_v56 }
 0x276   :  { %v215_v59 = vmul.f32 %v1252_v55, %v214_v57  ;;  %v242_v60 = vsel %vm241_vm6, %v1250_v48, %v238_v58 }
 0x277   :  { %v1409_v61 = vmul.f32 %v242_v60, %v195_v34 }
 0x278   :  { %v216_v62 = vmul.f32 0.5, %v215_v59 }
 0x279   :  { %v248_v63 = vmax.f32 %v1409_v61, 0.0 }
 0x27a   :  { %v217_v1 = vsub.f32 1.5, %v216_v62 }
 0x27b   :  { %v1254_v0 = vpop.eup %1253  ;;  %262 = vmatpush.msra.mxu2 %v248_v63 }
 0x27c   :  { %v224_v2 = vmul.f32 %v1254_v0, %v211_v56  ;;  %v218_v5 = vmul.f32 %v1252_v55, %v217_v1  ;;  %vm230_vm9 = vweird.f32 %v1254_v0 }
 0x27d   :  { %vm231_vm12 = vmor %vm229_vm11, %vm230_vm9 }
 0x27e   :  { %v225_v3 = vmul.f32 %v1254_v0, %v224_v2  ;;  %v222_v8 = vsel %vm221_vm10, %v1252_v55, %v218_v5 }
 0x27f   :  { %v243_v11 = vmul.f32 %v222_v8, %v189_v38 }
 0x280   :  { %v226_v4 = vmul.f32 0.5, %v225_v3 }
 0x281   :  { %v246_v13 = vmax.f32 %v243_v11, 0.0 }
 0x282   :  { %v227_v6 = vsub.f32 1.5, %v226_v4 }
 0x284   :  { %v228_v7 = vmul.f32 %v1254_v0, %v227_v6 }
 0x286   :  { %v232_v9 = vsel %vm231_vm12, %v1254_v0, %v228_v7 }
 0x287   :  { %v244_v10 = vmul.f32 %v232_v9, %v192_v42 }
 0x289   :  { %v247_v12 = vmax.f32 %v244_v10, 0.0 }
 0x28b   :  { %263 = vmatpush.msra.mxu2 %v247_v12 }
 0x28d   :  { %264 = vmatpush.msra.mxu2 %v246_v13 }
 0x28e   :  { %1178 = vmatmul.msk.f32.vlgmr.msra.gmra.mxu2 %vm21_vm0, %v1382_v15 }
 0x28f   :  { %309 = vmatpush.msrb.mxu2 %v48_v14 }
 0x291   :  { %310 = vmatpush.msrb.mxu2 %v47_v16 }
 0x293   :  { %311 = vmatpush.msrb.mxu2 %v46_v17 }
 0x295   :  { %312 = vmatpush.msrb.mxu2 %v45_v19  ;;  %v56_v19 = vld [vmem:[%s1857_s2 + $0x80] sm:$0xff] }
 0x296   :  { %1179 = vmatmul.msk.f32.gmra.mxu2 %vm21_vm0, %v1386_v18  ;;  %437 = vmatpush.msra.mxu0 %v56_v19 }
 0x297   :  { %313 = vmatpush.msrb.mxu2 %v44_v21  ;;  %v55_v21 = vld [vmem:[%s1857_s2 + $0x78] sm:$0xff] }
 0x298   :  { %438 = vmatpush.msra.mxu0 %v55_v21 }
 0x299   :  { %314 = vmatpush.msrb.mxu2 %v43_v23  ;;  %v53_v23 = vld [vmem:[%s1857_s2 + $0x68] sm:$0xff] }
 0x29b   :  { %315 = vmatpush.msrb.mxu2 %v42_v24  ;;  %v52_v24 = vld [vmem:[%s1857_s2 + $0x60] sm:$0xff] }
 0x29d   :  { %316 = vmatpush.msrb.mxu2 %v41_v27 }
 0x29e   :  { %1180 = vmatmul.msk.f32.gmra.mxu2 %vm21_vm0, %v1390_v20 }
 0x311   :  { %v266_v22 = vpop.f32.mrf.mxu2 }
 0x319   :  { %v269_v25 = vpop.f32.mrf.mxu2 }
 0x31a   :  { %280 = vrot.lane.b32.xlu0 %v269_v25, %s1328_s19  ;;  %v51_v25 = vld [vmem:[%s1857_s2 + $0x58] sm:$0xff] }
 0x321   :  { %v272_v26 = vpop.f32.mrf.mxu2 }
 0x322   :  { %282 = vrot.lane.b32.xlu1 %v272_v26, %s1328_s19  ;;  %v50_v26 = vld [vmem:[%s1857_s2 + $0x50] sm:$0xff] }
 0x32a   :  { %278 = vrot.lane.b32.xlu1 %v266_v22, %s1328_s19  ;;  %v54_v22 = vld [vmem:[%s1857_s2 + $0x70] sm:$0xff] }
 0x32b   :  { %439 = vmatpush.msra.mxu0 %v54_v22 }
 0x32d   :  { %440 = vmatpush.msra.mxu0 %v53_v23 }
 0x32f   :  { %441 = vmatpush.msra.mxu0 %v52_v24 }
 0x331   :  { %442 = vmatpush.msra.mxu0 %v51_v25  ;;  %v1329_v25 = vmov 0.0  }
 0x333   :  { %443 = vmatpush.msra.mxu0 %v50_v26 }
 0x38c   :  { %v281_v28 = vpop.permute.xlu0 %280 }
 0x38d   :  { %v288_v29 = vsel %vm200_vm3, %v247_v12, %v281_v28 }
 0x38e   :  { %1182 = vmatmul.msk.f32.vlgmr.msra.gmra.mxu3 %vm291_vm13, %v288_v29 }
 0x394   :  { %v283_v30 = vpop.permute.xlu1 %282 }
 0x395   :  { %v289_v32 = vsel %vm200_vm3, %v248_v63, %v283_v30  ;;  %v49_v30 = vld [vmem:[%s1857_s2 + $0x48] sm:$0xff] }
 0x396   :  { %1183 = vmatmul.msk.f32.gmra.mxu3 %vm291_vm13, %v289_v32  ;;  %444 = vmatpush.msra.mxu0 %v49_v30  ;;  %v61_v30 = vld [vmem:[%s1857_s2 + $0xa8] sm:$0xff] }
 0x39c   :  { %v279_v33 = vpop.permute.xlu1 %278 }
 0x39d   :  { %v287_v34 = vsel %vm200_vm3, %v246_v13, %v279_v33 }
 0x39e   :  { %1181 = vmatmul.msk.f32.vlgmr.msrb.gmra.mxu2 %vm291_vm13, %v287_v34 }
 0x411   :  { %v321_v36 = vpop.f32.mrf.mxu3 }
 0x412   :  { %v322_v37 = vadd.f32 %v321_v36, %v290_v35 }
 0x414   :  { %v328_v38 = vmul.f32 %v322_v37, %v322_v37 }
 0x416   :  { %v333_v39 = vsel %vm200_vm3, %v328_v38, 0.0 }
 0x417   :  { %334 = vadd.xlane.f32.xlu0 %v333_v39  ;;  %v419_v39 = vperm.slane %v1403_v31, 2 }
 0x419   :  { %v324_v40 = vpop.f32.mrf.mxu3 }
 0x41a   :  { %v325_v41 = vadd.f32 %v324_v40, %v290_v35 }
 0x41c   :  { %v329_v42 = vmul.f32 %v325_v41, %v325_v41 }
 0x41e   :  { %v336_v43 = vsel %vm200_vm3, %v329_v42, 0.0 }
 0x41f   :  { %337 = vadd.xlane.f32.xlu1 %v336_v43 }
 0x421   :  { %v318_v44 = vpop.f32.mrf.mxu2 }
 0x422   :  { %v319_v45 = vadd.f32 %v318_v44, %v290_v35 }
 0x424   :  { %v327_v46 = vmul.f32 %v319_v45, %v319_v45 }
 0x426   :  { %v330_v47 = vsel %vm200_vm3, %v327_v46, 0.0 }
 0x427   :  { %331 = vadd.xlane.f32.xlu2 %v330_v47 }
 0x48a   :  { %v335_v48 = vpop.xlane.xlu0 %334 }
 0x48b   :  { %v340_v49 = vmax.f32 %v335_v48, 1e-24 }
 0x48d   :  { %1255 = vrsqrt.f32 %v340_v49  ;;  %vm358_vm15 = vweird.f32 %v340_v49 }
 0x492   :  { %v338_v50 = vpop.xlane.xlu1 %337 }
 0x493   :  { %v1256_v51 = vpop.eup %1255  ;;  %v341_v52 = vmax.f32 %v338_v50, 1e-24 }
 0x494   :  { %v353_v53 = vmul.f32 %v1256_v51, %v340_v49  ;;  %vm359_vm14 = vweird.f32 %v1256_v51 }
 0x495   :  { %1257 = vrsqrt.f32 %v341_v52  ;;  %vm360_vm4 = vmor %vm358_vm15, %vm359_vm14  ;;  %vm368_vm5 = vweird.f32 %v341_v52 }
 0x496   :  { %v354_v54 = vmul.f32 %v1256_v51, %v353_v53 }
 0x498   :  { %v355_v55 = vmul.f32 0.5, %v354_v54 }
 0x49a   :  { %v332_v56 = vpop.xlane.xlu2 %331  ;;  %v356_v59 = vsub.f32 1.5, %v355_v55 }
 0x49b   :  { %v1258_v57 = vpop.eup %1257  ;;  %v339_v58 = vmax.f32 %v332_v56, 1e-24 }
 0x49c   :  { %v363_v60 = vmul.f32 %v1258_v57, %v341_v52  ;;  %v357_v63 = vmul.f32 %v1256_v51, %v356_v59  ;;  %vm369_vm1 = vweird.f32 %v1258_v57 }
 0x49d   :  { %1259 = vrsqrt.f32 %v339_v58  ;;  %vm370_vm6 = vmor %vm368_vm5, %vm369_vm1  ;;  %vm348_vm8 = vweird.f32 %v339_v58 }
 0x49e   :  { %v364_v61 = vmul.f32 %v1258_v57, %v363_v60  ;;  %v361_v4 = vsel %vm360_vm4, %v1256_v51, %v357_v63 }
 0x49f   :  { %v373_v8 = vmul.f32 %v361_v4, %v322_v37 }
 0x4a0   :  { %v365_v62 = vmul.f32 0.5, %v364_v61 }
 0x4a1   :  { %v376_v12 = vmax.f32 %v373_v8, 0.0 }
 0x4a2   :  { %v366_v0 = vsub.f32 1.5, %v365_v62 }
 0x4a3   :  { %v1260_v1 = vpop.eup %1259 }
 0x4a4   :  { %v343_v2 = vmul.f32 %v1260_v1, %v339_v58  ;;  %v367_v3 = vmul.f32 %v1258_v57, %v366_v0  ;;  %vm349_vm7 = vweird.f32 %v1260_v1  ;;  %v503_v58 = vlaneseq }
 0x4a5   :  { %vm350_vm9 = vmor %vm348_vm8, %vm349_vm7 }
 0x4a6   :  { %v344_v5 = vmul.f32 %v1260_v1, %v343_v2  ;;  %v371_v6 = vsel %vm370_vm6, %v1258_v57, %v367_v3  ;;  %v1502_v0 = vshrl.u32 %v503_v58, 7 }
 0x4a7   :  { %v374_v7 = vmul.f32 %v371_v6, %v325_v41 }
 0x4a8   :  { %v345_v9 = vmul.f32 0.5, %v344_v5  ;;  %v507_v4 = vmul.u32 12, %v1502_v0 }
 0x4a9   :  { %v377_v10 = vmax.f32 %v374_v7, 0.0 }
 0x4aa   :  { %v346_v11 = vsub.f32 1.5, %v345_v9 }
 0x4ab   :  { %391 = vmatpush.msrb.mxu1 %v377_v10 }
 0x4ac   :  { %v347_v13 = vmul.f32 %v1260_v1, %v346_v11  ;;  %v509_v11 = vadd.s32 12, %v507_v4 }
 0x4ad   :  { %392 = vmatpush.msrb.mxu1 %v376_v12 }
 0x4ae   :  { %v351_v14 = vsel %vm350_vm9, %v1260_v1, %v347_v13 }
 0x4af   :  { %v372_v16 = vmul.f32 %v351_v14, %v319_v45 }
 0x4b1   :  { %v375_v17 = vmax.f32 %v372_v16, 0.0 }
 0x4b3   :  { %393 = vmatpush.msrb.mxu1 %v375_v17 }
 0x4b4   :  { %1184 = vmatmul.msk.f32.vlgmr.msrb.gmra.mxu1 %vm21_vm0, %v1382_v15 }
 0x4bc   :  { %1185 = vmatmul.msk.f32.gmra.mxu1 %vm21_vm0, %v1386_v18 }
 0x4c4   :  { %1186 = vmatmul.msk.f32.gmra.mxu1 %vm21_vm0, %v1390_v20 }
 0x531   :  { %v395_v27 = vpop.f32.mrf.mxu1 }
 0x532   :  { %407 = vrot.lane.b32.xlu2 %v395_v27, %s1328_s19  ;;  %v64_v27 = vld [vmem:[%s1857_s2 + $0xc0] sm:$0xff] }
 0x533   :  { %596 = vmatpush.msrb.mxu3 %v64_v27 }
 0x539   :  { %v398_v28 = vpop.f32.mrf.mxu1 }
 0x53a   :  { %409 = vrot.lane.b32.xlu2 %v398_v28, %s1328_s19  ;;  %v72_v28 = vld [vmem:[%s1857_s2 + $0x100] sm:$0xff] }
 0x53b   :  { %674 = vmatpush.msra.mxu1 %v72_v28 }
 0x541   :  { %v401_v29 = vpop.f32.mrf.mxu1 }
 0x542   :  { %411 = vrot.lane.b32.xlu1 %v401_v29, %s1328_s19  ;;  %v63_v29 = vld [vmem:[%s1857_s2 + $0xb8] sm:$0xff] }
 0x543   :  { %597 = vmatpush.msrb.mxu3 %v63_v29 }
 0x58c   :  { %v408_v32 = vpop.permute.xlu2 %407 }
 0x58d   :  { %v416_v33 = vsel %vm200_vm3, %v375_v17, %v408_v32  ;;  %v69_v32 = vld [vmem:[%s1857_s2 + $0xe8] sm:$0xff] }
 0x58e   :  { %1187 = vmatmul.msk.f32.vlgmr.msra.gmra.mxu0 %vm291_vm13, %v416_v33  ;;  %v60_v33 = vld [vmem:[%s1857_s2 + $0xa0] sm:$0xff] }
 0x594   :  { %v410_v34 = vpop.permute.xlu2 %409 }
 0x595   :  { %v417_v35 = vsel %vm200_vm3, %v376_v12, %v410_v34  ;;  %v68_v34 = vld [vmem:[%s1857_s2 + $0xe0] sm:$0xff] }
 0x596   :  { %1188 = vmatmul.msk.f32.gmra.mxu0 %vm291_vm13, %v417_v35 }
 0x5b4   :  { %v412_v36 = vpop.permute.xlu1 %411 }
 0x5b5   :  { %v418_v37 = vsel %vm200_vm3, %v377_v10, %v412_v36  ;;  %v1505_v10 = vand.u32 127, %v503_v58 }
 0x5b6   :  { %1189 = vmatmul.msk.f32.gmra.mxu0 %vm291_vm13, %v418_v37  ;;  %v59_v37 = vld [vmem:[%s1857_s2 + $0x98] sm:$0xff] }
 0x5b7   :  { %vm508_vm4 = vcmp.ge.s32.totalorder %v1505_v10, %v507_v4  ;;  %vm510_vm5 = vcmp.lt.s32.totalorder %v1505_v10, %v509_v11 }
 0x5b8   :  { %vm511_vm8 = vmand %vm508_vm4, %vm510_vm5 }
 0x5b9   :  { %v1190_v26 = vsel %vm511_vm8, 1.0, %v1329_v25 }
 0x60b   :  { %v446_v38 = vpop.f32.mrf.mxu0 }
 0x60c   :  { %v447_v47 = vadd.f32 %v446_v38, %v419_v39  ;;  %v67_v38 = vld [vmem:[%s1857_s2 + $0xd8] sm:$0xff] }
 0x60e   :  { %v455_v49 = vmul.f32 %v447_v47, %v447_v47 }
 0x610   :  { %v458_v50 = vsel %vm200_vm3, %v455_v49, 0.0 }
 0x613   :  { %v449_v40 = vpop.f32.mrf.mxu0 }
 0x614   :  { %v450_v41 = vadd.f32 %v449_v40, %v419_v39  ;;  %v66_v40 = vld [vmem:[%s1857_s2 + $0xd0] sm:$0xff] }
 0x616   :  { %v456_v42 = vmul.f32 %v450_v41, %v450_v41 }
 0x618   :  { %v461_v43 = vsel %vm200_vm3, %v456_v42, 0.0 }
 0x619   :  { %462 = vadd.xlane.f32.xlu2 %v461_v43 }
 0x633   :  { %v452_v44 = vpop.f32.mrf.mxu0 }
 0x634   :  { %v453_v45 = vadd.f32 %v452_v44, %v419_v39  ;;  %v58_v39 = vld [vmem:[%s1857_s2 + $0x90] sm:$0xff]  ;;  %v57_v44 = vld [vmem:[%s1857_s2 + $0x88] sm:$0xff] }
 0x636   :  { %v457_v46 = vmul.f32 %v453_v45, %v453_v45 }
 0x638   :  { %v464_v48 = vsel %vm200_vm3, %v457_v46, 0.0 }
 0x639   :  { %465 = vadd.xlane.f32.xlu0 %v464_v48 }
 0x641   :  { %459 = vadd.xlane.f32.xlu0 %v458_v50 }
 0x68c   :  { %v463_v51 = vpop.xlane.xlu2 %462 }
 0x68d   :  { %v468_v52 = vmax.f32 %v463_v51, 1e-24 }
 0x68f   :  { %1261 = vrsqrt.f32 %v468_v52  ;;  %vm486_vm12 = vweird.f32 %v468_v52 }
 0x695   :  { %v1262_v53 = vpop.eup %1261 }
 0x696   :  { %v481_v54 = vmul.f32 %v1262_v53, %v468_v52  ;;  %vm487_vm10 = vweird.f32 %v1262_v53  ;;  %v762_v52 = vmul.u32 8, %v1502_v0 }
 0x697   :  { %vm488_vm14 = vmor %vm486_vm12, %vm487_vm10 }
 0x698   :  { %v482_v57 = vmul.f32 %v1262_v53, %v481_v54  ;;  %vm763_vm10 = vcmp.ge.s32.totalorder %v1505_v10, %v762_v52  ;;  %v91_v54 = vld [vmem:[%s1857_s2 + $0x198] sm:$0xff] }
 0x69a   :  { %v483_v59 = vmul.f32 0.5, %v482_v57 }
 0x69c   :  { %v484_v1 = vsub.f32 1.5, %v483_v59  ;;  %v1603_v59 = vadd.s32 8, %v1502_v0 }
 0x69e   :  { %v485_v6 = vmul.f32 %v1262_v53, %v484_v1 }
 0x6a0   :  { %v489_v14 = vsel %vm488_vm14, %v1262_v53, %v485_v6  ;;  %v764_v53 = vadd.s32 8, %v762_v52 }
 0x6a1   :  { %v1510_v19 = vmul.f32 %v489_v14, %v450_v41 }
 0x6ac   :  { %v466_v55 = vpop.xlane.xlu0 %465 }
 0x6ad   :  { %v469_v56 = vmax.f32 %v466_v55, 1e-24  ;;  %v745_v55 = vmul.u32 12, %v1505_v10 }
 0x6af   :  { %1263 = vrsqrt.f32 %v469_v56  ;;  %vm496_vm15 = vweird.f32 %v469_v56  ;;  %v749_v57 = vadd.s32 12, %v745_v55  ;;  %vm746_vm14 = vcmp.ge.s32.totalorder %v1502_v0, %v745_v55 }
 0x6b0   :  { %vm747_vm4 = vcmp.ge.s32.totalorder %v1603_v59, %v745_v55 }
 0x6b1   :  { %vm751_vm5 = vcmp.lt.s32.totalorder %v1603_v59, %v749_v57 }
 0x6b4   :  { %v460_v60 = vpop.xlane.xlu0 %459 }
 0x6b5   :  { %v1264_v61 = vpop.eup %1263  ;;  %v467_v62 = vmax.f32 %v460_v60, 1e-24  ;;  %v744_v60 = vadd.s32 16, %v1502_v0 }
 0x6b6   :  { %v491_v63 = vmul.f32 %v1264_v61, %v469_v56  ;;  %vm497_vm11 = vweird.f32 %v1264_v61  ;;  %v1330_v56 = vmov 1.0  }
 0x6b7   :  { %1265 = vrsqrt.f32 %v467_v62  ;;  %vm498_vm1 = vmor %vm496_vm15, %vm497_vm11  ;;  %vm476_vm7 = vweird.f32 %v467_v62  ;;  %vm765_vm11 = vcmp.lt.s32.totalorder %v1505_v10, %v764_v53  ;;  %vm750_vm15 = vcmp.lt.s32.totalorder %v1502_v0, %v749_v57 }
 0x6b8   :  { %v492_v2 = vmul.f32 %v1264_v61, %v491_v63  ;;  %vm1591_vm12 = vmand %vm763_vm10, %vm765_vm11  ;;  %vm752_vm8 = vcmp.lt.s32.totalorder %v744_v60, %v749_v57 }
 0x6b9   :  { %1205 = vmatpush.msk.msrb.mxu0 %vm1591_vm12, %v1330_v56 }
 0x6ba   :  { %v493_v3 = vmul.f32 0.5, %v492_v2 }
 0x6bc   :  { %v494_v5 = vsub.f32 1.5, %v493_v3 }
 0x6bd   :  { %v1266_v7 = vpop.eup %1265 }
 0x6be   :  { %v495_v8 = vmul.f32 %v1264_v61, %v494_v5  ;;  %v471_v9 = vmul.f32 %v1266_v7, %v467_v62  ;;  %vm477_vm6 = vweird.f32 %v1266_v7  ;;  %v665_v62 = vperm.slane %v1403_v31, 4 }
 0x6bf   :  { %vm478_vm9 = vmor %vm476_vm7, %vm477_vm6  ;;  %vm748_vm7 = vcmp.ge.s32.totalorder %v744_v60, %v745_v55 }
 0x6c0   :  { %v499_v12 = vsel %vm498_vm1, %v1264_v61, %v495_v8  ;;  %v472_v13 = vmul.f32 %v1266_v7, %v471_v9  ;;  %vm753_vm1 = vmand %vm746_vm14, %vm750_vm15  ;;  %vm807_vm15 = vcmask 130048  }
 0x6c1   :  { %v1507_v16 = vmul.f32 %v499_v12, %v453_v45  ;;  %v65_v45 = vld [vmem:[%s1857_s2 + $0xc8] sm:$0xff]  ;;  %v1201_v58 = vsel %vm753_vm1, 1.0, %v1329_v25  ;;  %vm754_vm6 = vmand %vm747_vm4, %vm751_vm5 }
 0x6c2   :  { %v473_v17 = vmul.f32 0.5, %v472_v13  ;;  %1206 = vmatmul.msk.f32.vlgmr.msrb.gmra.mxu0 %vm161_vm2, %v1201_v58  ;;  %v1202_v61 = vsel %vm754_vm6, 1.0, %v1329_v25 }
 0x6c3   :  { %530 = vmatpush.msra.mxu2 %v1507_v16 }
 0x6c4   :  { %v474_v21 = vsub.f32 1.5, %v473_v17 }
 0x6c5   :  { %531 = vmatpush.msra.mxu2 %v1510_v19 }
 0x6c6   :  { %v475_v22 = vmul.f32 %v1266_v7, %v474_v21 }
 0x6c8   :  { %v479_v23 = vsel %vm478_vm9, %v1266_v7, %v475_v22  ;;  %vm755_vm9 = vmand %vm748_vm7, %vm752_vm8 }
 0x6c9   :  { %v500_v24 = vmul.f32 %v479_v23, %v447_v47  ;;  %v1203_v2 = vsel %vm755_vm9, 1.0, %v1329_v25 }
 0x6ca   :  { %1207 = vmatmul.msk.f32.gmra.mxu0 %vm161_vm2, %v1202_v61 }
 0x6cb   :  { %532 = vmatpush.msra.mxu2 %v500_v24 }
 0x6cc   :  { %1191 = vmatmul.msk.f32.vlgmr.msra.gmra.mxu2 %vm21_vm0, %v1190_v26 }
 0x6cd   :  { %550 = vmatpush.msrb.mxu2 %v1507_v16 }
 0x6cf   :  { %551 = vmatpush.msrb.mxu2 %v1510_v19 }
 0x6d1   :  { %552 = vmatpush.msrb.mxu2 %v500_v24 }
 0x6d2   :  { %1208 = vmatmul.msk.f32.gmra.mxu0 %vm161_vm2, %v1203_v2 }
 0x6d4   :  { %1192 = vmatmul.msk.f32.vlgmr.msrb.gmra.mxu2 %vm21_vm0, %v1382_v15  ;;  %v71_v15 = vld [vmem:[%s1857_s2 + $0xf8] sm:$0xff] }
 0x6d5   :  { %675 = vmatpush.msra.mxu1 %v71_v15 }
 0x6dc   :  { %1193 = vmatmul.msk.f32.gmra.mxu2 %vm21_vm0, %v1386_v18  ;;  %v62_v18 = vld [vmem:[%s1857_s2 + $0xb0] sm:$0xff] }
 0x6dd   :  { %598 = vmatpush.msrb.mxu3 %v62_v18 }
 0x6df   :  { %599 = vmatpush.msrb.mxu3 %v61_v30 }
 0x6e1   :  { %600 = vmatpush.msrb.mxu3 %v60_v33 }
 0x6e3   :  { %601 = vmatpush.msrb.mxu3 %v59_v37 }
 0x6e4   :  { %1194 = vmatmul.msk.f32.gmra.mxu2 %vm21_vm0, %v1390_v20  ;;  %v70_v20 = vld [vmem:[%s1857_s2 + $0xf0] sm:$0xff] }
 0x6e5   :  { %676 = vmatpush.msra.mxu1 %v70_v20  ;;  %602 = vmatpush.msrb.mxu3 %v58_v39 }
 0x6e7   :  { %677 = vmatpush.msra.mxu1 %v69_v32  ;;  %603 = vmatpush.msrb.mxu3 %v57_v44 }
 0x6e9   :  { %678 = vmatpush.msra.mxu1 %v68_v34 }
 0x6eb   :  { %679 = vmatpush.msra.mxu1 %v67_v38 }
 0x6ed   :  { %680 = vmatpush.msra.mxu1 %v66_v40 }
 0x6ef   :  { %681 = vmatpush.msra.mxu1 %v65_v45 }
 0x73f   :  { %v1616_v20 = vpop.f32.mrf.mxu0 }
 0x747   :  { %v1620_v44 = vpop.f32.mrf.mxu0 }
 0x74f   :  { %v534_v35 = vpop.f32.mrf.mxu2  ;;  %v1624_v55 = vpop.f32.mrf.mxu0 }
 0x750   :  { %v1146_v36 = vsel %vm200_vm3, %v534_v35, 0.0 }
 0x751   :  { %1152 = vst [vmem:[#allocation2 + $0x20] sm:$0xff] %v1146_v36 }
 0x757   :  { %v554_v41 = vpop.f32.mrf.mxu2 }
 0x758   :  { %566 = vrot.lane.b32.xlu0 %v554_v41, %s1328_s19 }
 0x75f   :  { %v557_v42 = vpop.f32.mrf.mxu2 }
 0x760   :  { %568 = vrot.lane.b32.xlu1 %v557_v42, %s1328_s19 }
 0x767   :  { %v560_v43 = vpop.f32.mrf.mxu2 }
 0x768   :  { %570 = vrot.lane.b32.xlu1 %v560_v43, %s1328_s19 }
 0x7ca   :  { %v567_v46 = vpop.permute.xlu0 %566 }
 0x7cb   :  { %v575_v47 = vsel %vm200_vm3, %v500_v24, %v567_v46 }
 0x7cc   :  { %1195 = vmatmul.msk.f32.vlgmr.msrb.gmra.mxu3 %vm291_vm13, %v575_v47  ;;  %1198 = vmatmul.msk.f32.vlgmr.msra.gmra.mxu1 %vm291_vm13, %v575_v47 }
 0x7d2   :  { %v569_v48 = vpop.permute.xlu1 %568 }
 0x7d3   :  { %v576_v49 = vsel %vm200_vm3, %v1510_v19, %v569_v48 }
 0x7d4   :  { %1196 = vmatmul.msk.f32.gmra.mxu3 %vm291_vm13, %v576_v49  ;;  %1199 = vmatmul.msk.f32.gmra.mxu1 %vm291_vm13, %v576_v49 }
 0x7da   :  { %v571_v50 = vpop.permute.xlu1 %570 }
 0x7db   :  { %v577_v51 = vsel %vm200_vm3, %v1507_v16, %v571_v50 }
 0x7dc   :  { %1197 = vmatmul.msk.f32.gmra.mxu3 %vm291_vm13, %v577_v51  ;;  %1200 = vmatmul.msk.f32.gmra.mxu1 %vm291_vm13, %v577_v51 }
 0x849   :  { %v683_v63 = vpop.f32.mrf.mxu1 }
 0x84a   :  { %v684_v1 = vadd.f32 %v683_v63, %v665_v62 }
 0x84c   :  { %v692_v3 = vmul.f32 %v684_v1, %v684_v1 }
 0x84e   :  { %v695_v4 = vsel %vm200_vm3, %v692_v3, 0.0 }
 0x84f   :  { %696 = vadd.xlane.f32.xlu0 %v695_v4  ;;  %v605_v60 = vpop.f32.mrf.mxu3  ;;  %v578_v4 = vperm.slane %v1403_v31, 3 }
 0x851   :  { %v686_v5 = vpop.f32.mrf.mxu1 }
 0x852   :  { %v687_v6 = vadd.f32 %v686_v5, %v665_v62 }
 0x854   :  { %v693_v7 = vmul.f32 %v687_v6, %v687_v6 }
 0x856   :  { %v698_v8 = vsel %vm200_vm3, %v693_v7, 0.0 }
 0x857   :  { %699 = vadd.xlane.f32.xlu1 %v698_v8  ;;  %v608_v2 = vpop.f32.mrf.mxu3 }
 0x858   :  { %v1629_v7 = vadd.f32 %v608_v2, %v578_v4 }
 0x859   :  { %v689_v9 = vpop.f32.mrf.mxu1 }
 0x85a   :  { %v690_v11 = vadd.f32 %v689_v9, %v665_v62 }
 0x85c   :  { %v694_v12 = vmul.f32 %v690_v11, %v690_v11 }
 0x85e   :  { %v701_v13 = vsel %vm200_vm3, %v694_v12, 0.0 }
 0x85f   :  { %702 = vadd.xlane.f32.xlu2 %v701_v13  ;;  %v611_v31 = vpop.f32.mrf.mxu3 }
 0x8c2   :  { %v697_v14 = vpop.xlane.xlu0 %696 }
 0x8c3   :  { %v704_v16 = vmax.f32 %v697_v14, 1e-24 }
 0x8c5   :  { %1267 = vrsqrt.f32 %v704_v16  ;;  %vm713_vm10 = vweird.f32 %v704_v16 }
 0x8ca   :  { %v700_v17 = vpop.xlane.xlu1 %699 }
 0x8cb   :  { %v1268_v19 = vpop.eup %1267  ;;  %v705_v21 = vmax.f32 %v700_v17, 1e-24 }
 0x8cc   :  { %v708_v22 = vmul.f32 %v1268_v19, %v704_v16  ;;  %vm714_vm2 = vweird.f32 %v1268_v19 }
 0x8cd   :  { %1269 = vrsqrt.f32 %v705_v21  ;;  %vm715_vm11 = vmor %vm713_vm10, %vm714_vm2  ;;  %vm723_vm1 = vweird.f32 %v705_v21 }
 0x8ce   :  { %v709_v23 = vmul.f32 %v1268_v19, %v708_v22 }
 0x8d0   :  { %v710_v24 = vmul.f32 0.5, %v709_v23 }
 0x8d2   :  { %v711_v26 = vsub.f32 1.5, %v710_v24  ;;  %v703_v27 = vpop.xlane.xlu2 %702  ;;  %v1641_v24 = vadd.f32 %v605_v60, %v578_v4 }
 0x8d3   :  { %v1270_v28 = vpop.eup %1269  ;;  %v706_v29 = vmax.f32 %v703_v27, 1e-24 }
 0x8d4   :  { %v718_v15 = vmul.f32 %v1270_v28, %v705_v21  ;;  %v712_v18 = vmul.f32 %v1268_v19, %v711_v26  ;;  %vm724_vm14 = vweird.f32 %v1270_v28  ;;  %v1636_v21 = vadd.f32 %v611_v31, %v578_v4 }
 0x8d5   :  { %1271 = vrsqrt.f32 %v706_v29  ;;  %vm725_vm4 = vmor %vm723_vm1, %vm724_vm14  ;;  %vm733_vm6 = vweird.f32 %v706_v29  ;;  %v614_v27 = vmul.f32 %v1641_v24, %v1641_v24 }
 0x8d6   :  { %v719_v30 = vmul.f32 %v1270_v28, %v718_v15  ;;  %v716_v32 = vsel %vm715_vm11, %v1268_v19, %v712_v18  ;;  %v616_v23 = vmul.f32 %v1636_v21, %v1636_v21 }
 0x8d7   :  { %v737_v33 = vmul.f32 %v716_v32, %v684_v1 }
 0x8d8   :  { %v720_v34 = vmul.f32 0.5, %v719_v30  ;;  %v623_v26 = vsel %vm200_vm3, %v616_v23, 0.0 }
 0x8d9   :  { %v740_v35 = vmax.f32 %v737_v33, 0.0 }
 0x8da   :  { %v721_v36 = vsub.f32 1.5, %v720_v34 }
 0x8db   :  { %v1272_v37 = vpop.eup %1271  ;;  %v804_v38 = vmul.f32 %v1616_v20, %v740_v35 }
 0x8dc   :  { %v728_v39 = vmul.f32 %v1272_v37, %v706_v29  ;;  %v722_v40 = vmul.f32 %v1270_v28, %v721_v36  ;;  %vm734_vm5 = vweird.f32 %v1272_v37 }
 0x8dd   :  { %v808_v41 = vsel %vm807_vm15, %v804_v38, -inf  ;;  %vm735_vm7 = vmor %vm733_vm6, %vm734_vm5 }
 0x8de   :  { %v729_v42 = vmul.f32 %v1272_v37, %v728_v39  ;;  %809 = vmax.xlane.f32.xlu2 %v808_v41  ;;  %v726_v43 = vsel %vm725_vm4, %v1270_v28, %v722_v40  ;;  %v617_v28 = vsel %vm200_vm3, %v614_v27, 0.0 }
 0x8df   :  { %v738_v45 = vmul.f32 %v726_v43, %v687_v6 }
 0x8e0   :  { %v730_v46 = vmul.f32 0.5, %v729_v42 }
 0x8e1   :  { %v741_v47 = vmax.f32 %v738_v45, 0.0 }
 0x8e2   :  { %v731_v48 = vsub.f32 1.5, %v730_v46 }
 0x8e3   :  { %v805_v49 = vmul.f32 %v1620_v44, %v741_v47 }
 0x8e4   :  { %v732_v50 = vmul.f32 %v1272_v37, %v731_v48 }
 0x8e5   :  { %v811_v51 = vsel %vm807_vm15, %v805_v49, -inf }
 0x8e6   :  { %812 = vmax.xlane.f32.xlu2 %v811_v51  ;;  %v736_v52 = vsel %vm735_vm7, %v1272_v37, %v732_v50 }
 0x8e7   :  { %v739_v53 = vmul.f32 %v736_v52, %v690_v11  ;;  %v615_v11 = vmul.f32 %v1629_v7, %v1629_v7 }
 0x8e9   :  { %v742_v56 = vmax.f32 %v739_v53, 0.0  ;;  %v620_v16 = vsel %vm200_vm3, %v615_v11, 0.0 }
 0x8eb   :  { %v806_v57 = vmul.f32 %v1624_v55, %v742_v56 }
 0x8ed   :  { %v814_v58 = vsel %vm807_vm15, %v806_v57, -inf }
 0x8ee   :  { %815 = vmax.xlane.f32.xlu2 %v814_v58 }
 0x951   :  { %v810_v61 = vpop.xlane.xlu2 %809 }
 0x952   :  { %v817_v62 = vsub.f32 %v804_v38, %v810_v61 }
 0x954   :  { %v820_v63 = vmul.f32 1.442695, %v817_v62 }
 0x956   :  { %1273 = vpow2.f32 %v820_v63 }
 0x959   :  { %v813_v1 = vpop.xlane.xlu2 %812 }
 0x95a   :  { %v818_v3 = vsub.f32 %v805_v49, %v813_v1 }
 0x95c   :  { %v1274_v5 = vpop.eup %1273  ;;  %v822_v6 = vmul.f32 1.442695, %v818_v3 }
 0x95d   :  { %v826_v8 = vsel %vm807_vm15, %v1274_v5, 0.0 }
 0x95e   :  { %1275 = vpow2.f32 %v822_v6  ;;  %827 = vadd.xlane.f32.xlu2 %v826_v8 }
 0x961   :  { %v816_v9 = vpop.xlane.xlu2 %815 }
 0x962   :  { %v819_v12 = vsub.f32 %v806_v57, %v816_v9 }
 0x964   :  { %v1276_v13 = vpop.eup %1275  ;;  %v824_v14 = vmul.f32 1.442695, %v819_v12 }
 0x965   :  { %v829_v17 = vsel %vm807_vm15, %v1276_v13, 0.0 }
 0x966   :  { %1277 = vpow2.f32 %v824_v14  ;;  %621 = vadd.xlane.f32.xlu2 %v620_v16  ;;  %830 = vadd.xlane.f32.xlu0 %v829_v17 }
 0x96c   :  { %v1278_v19 = vpop.eup %1277 }
 0x96d   :  { %v832_v22 = vsel %vm807_vm15, %v1278_v19, 0.0 }
 0x96e   :  { %833 = vadd.xlane.f32.xlu1 %v832_v22 }
 0x976   :  { %624 = vadd.xlane.f32.xlu1 %v623_v26 }
 0x97e   :  { %618 = vadd.xlane.f32.xlu1 %v617_v28 }
 0x9d1   :  { %v828_v29 = vpop.xlane.xlu2 %827 }
 0x9d2   :  { %1279 = vrcp.f32 %v828_v29 }
 0x9d8   :  { %v1280_v15 = vpop.eup %1279 }
 0x9d9   :  { %v831_v18 = vpop.xlane.xlu0 %830  ;;  %v622_v30 = vpop.xlane.xlu2 %621  ;;  %v838_v32 = vmul.f32 %v1280_v15, %v1274_v5  ;;  %v1297_v15 = vld [vmem:[%s1856_s1] sm:$0xff] }
 0x9da   :  { %1281 = vrcp.f32 %v831_v18  ;;  %v627_v33 = vmax.f32 %v622_v30, 1e-24  ;;  %v1298_v18 = vld [vmem:[%s1856_s1 + $0x8] sm:$0xff]  ;;  %v1299_v30 = vld [vmem:[%s1856_s1 + $0x10] sm:$0xff]  ;;  %s1331_s1 = smov 64  }
 0x9db   :  { %v1648_v34 = vmul.f32 %v838_v32, %v1616_v20 }
 0x9dc   :  { %1283 = vrsqrt.f32 %v627_v33  ;;  %vm645_vm9 = vweird.f32 %v627_v33 }
 0x9dd   :  { %v844_v35 = vsel %vm807_vm15, %v1648_v34, 0.0 }
 0x9de   :  { %845 = vadd.xlane.f32.xlu2 %v844_v35 }
 0x9e0   :  { %v1282_v36 = vpop.eup %1281 }
 0x9e1   :  { %v834_v37 = vpop.xlane.xlu1 %833  ;;  %v839_v38 = vmul.f32 %v1282_v36, %v1276_v13 }
 0x9e2   :  { %1285 = vrcp.f32 %v834_v37  ;;  %v1284_v40 = vpop.eup %1283 }
 0x9e3   :  { %v1653_v39 = vmul.f32 %v839_v38, %v1620_v44  ;;  %v640_v42 = vmul.f32 %v1284_v40, %v627_v33  ;;  %vm646_vm8 = vweird.f32 %v1284_v40 }
 0x9e4   :  { %vm647_vm10 = vmor %vm645_vm9, %vm646_vm8 }
 0x9e5   :  { %v847_v41 = vsel %vm807_vm15, %v1653_v39, 0.0  ;;  %v641_v47 = vmul.f32 %v1284_v40, %v640_v42 }
 0x9e6   :  { %848 = vadd.xlane.f32.xlu0 %v847_v41 }
 0x9e7   :  { %v642_v50 = vmul.f32 0.5, %v641_v47  ;;  %v88_v47 = vld [vmem:[%s1857_s2 + $0x180] sm:$0xff] }
 0x9e8   :  { %v1286_v20 = vpop.eup %1285 }
 0x9e9   :  { %v625_v43 = vpop.xlane.xlu1 %624  ;;  %v840_v45 = vmul.f32 %v1286_v20, %v1278_v19  ;;  %v643_v53 = vsub.f32 1.5, %v642_v50  ;;  %v104_v50 = vld [vmem:[%s1857_s2 + $0x200] sm:$0xff] }
 0x9ea   :  { %v628_v46 = vmax.f32 %v625_v43, 1e-24 }
 0x9eb   :  { %v843_v48 = vmul.f32 %v840_v45, %v1624_v55  ;;  %v644_v60 = vmul.f32 %v1284_v40, %v643_v53  ;;  %v1009_v45 = vmul.u32 32, %v1502_v0 }
 0x9ec   :  { %1287 = vrsqrt.f32 %v628_v46  ;;  %vm655_vm11 = vweird.f32 %v628_v46 }
 0x9ed   :  { %v850_v49 = vsel %vm807_vm15, %v843_v48, 0.0  ;;  %v648_v1 = vsel %vm647_vm10, %v1284_v40, %v644_v60  ;;  %v101_v60 = vld [vmem:[%s1857_s2 + $0x1e8] sm:$0xff] }
 0x9ee   :  { %851 = vadd.xlane.f32.xlu0 %v850_v49  ;;  %v660_v5 = vmul.f32 %v648_v1, %v1629_v7  ;;  %v1015_v49 = vadd.s32 32, %v1009_v45 }
 0x9f0   :  { %v663_v11 = vmax.f32 %v660_v5, 0.0  ;;  %vm1017_vm6 = vcmp.lt.s32.totalorder %v1505_v10, %v1015_v49 }
 0x9f1   :  { %v619_v44 = vpop.xlane.xlu1 %618 }
 0x9f2   :  { %v1288_v51 = vpop.eup %1287  ;;  %v626_v52 = vmax.f32 %v619_v44, 1e-24  ;;  %v1710_v44 = vadd.s32 128, %v1505_v10 }
 0x9f3   :  { %v650_v56 = vmul.f32 %v1288_v51, %v628_v46  ;;  %vm656_vm2 = vweird.f32 %v1288_v51  ;;  %v1010_v46 = vmul.u32 32, %v1603_v59  ;;  %v86_v59 = vld [vmem:[%s1857_s2 + $0x170] sm:$0xff] }
 0x9f4   :  { %1289 = vrsqrt.f32 %v626_v52  ;;  %vm657_vm14 = vmor %vm655_vm11, %vm656_vm2  ;;  %vm635_vm4 = vweird.f32 %v626_v52  ;;  %vm1012_vm7 = vcmp.ge.s32.totalorder %v1710_v44, %v1009_v45  ;;  %vm1018_vm8 = vcmp.lt.s32.totalorder %v1710_v44, %v1015_v49  ;;  %v89_v49 = vld [vmem:[%s1857_s2 + $0x188] sm:$0xff] }
 0x9f5   :  { %v651_v57 = vmul.f32 %v1288_v51, %v650_v56  ;;  %v1016_v53 = vadd.s32 32, %v1010_v46  ;;  %v1220_v56 = vadd.s32 4294967288, %v1502_v0  ;;  %v84_v0 = vld [vmem:[%s1857_s2 + $0x160] sm:$0xff]  ;;  %vm1013_vm9 = vcmp.ge.s32.totalorder %v1505_v10, %v1010_v46 }
 0x9f6   :  { %vm1014_vm10 = vcmp.ge.s32.totalorder %v1710_v44, %v1010_v46  ;;  %v1204_v46 = vsel %vm1591_vm12, 1.0, %v1329_v25 }
 0x9f7   :  { %v652_v58 = vmul.f32 0.5, %v651_v57  ;;  %v102_v57 = vld [vmem:[%s1857_s2 + $0x1f0] sm:$0xff]  ;;  %vm1019_vm2 = vcmp.lt.s32.totalorder %v1505_v10, %v1016_v53  ;;  %vm1020_vm11 = vcmp.lt.s32.totalorder %v1710_v44, %v1016_v53 }
 0x9f9   :  { %v653_v61 = vsub.f32 1.5, %v652_v58  ;;  %v85_v58 = vld [vmem:[%s1857_s2 + $0x168] sm:$0xff] }
 0x9fa   :  { %v1290_v62 = vpop.eup %1289 }
 0x9fb   :  { %v654_v55 = vmul.f32 %v1288_v51, %v653_v61  ;;  %v630_v63 = vmul.f32 %v1290_v62, %v626_v52  ;;  %vm636_vm1 = vweird.f32 %v1290_v62  ;;  %v1038_v61 = vmul.u32 32, %v1220_v56 }
 0x9fc   :  { %vm637_vm5 = vmor %vm635_vm4, %vm636_vm1 }
 0x9fd   :  { %v658_v2 = vsel %vm657_vm14, %v1288_v51, %v654_v55  ;;  %v631_v3 = vmul.f32 %v1290_v62, %v630_v63  ;;  %v103_v51 = vld [vmem:[%s1857_s2 + $0x1f8] sm:$0xff]  ;;  %vm1753_vm1 = vmand %vm1012_vm7, %vm1018_vm8  ;;  %v1041_v5 = vadd.s32 32, %v1038_v61  ;;  %vm1040_vm7 = vcmp.ge.s32.totalorder %v1710_v44, %v1038_v61 }
 0x9fe   :  { %v661_v4 = vmul.f32 %v658_v2, %v1636_v21  ;;  %v83_v63 = vld [vmem:[%s1857_s2 + $0x158] sm:$0xff]  ;;  %vm1023_vm4 = vmand %vm1013_vm9, %vm1019_vm2  ;;  %vm1005_vm9 = vcmask 785408  }
 0x9ff   :  { %v632_v6 = vmul.f32 0.5, %v631_v3  ;;  %v99_v2 = vld [vmem:[%s1857_s2 + $0x1d8] sm:$0xff]  ;;  %v82_v3 = vld [vmem:[%s1857_s2 + $0x150] sm:$0xff]  ;;  %vm1043_vm8 = vcmp.lt.s32.totalorder %v1710_v44, %v1041_v5 }
 0xa00   :  { %v664_v8 = vmax.f32 %v661_v4, 0.0 }
 0xa01   :  { %v633_v9 = vsub.f32 1.5, %v632_v6  ;;  %v98_v6 = vld [vmem:[%s1857_s2 + $0x1d0] sm:$0xff] }
 0xa02   :  { %913 = vmatpush.msra.mxu2 %v664_v8  ;;  %v81_v8 = vld [vmem:[%s1857_s2 + $0x148] sm:$0xff] }
 0xa03   :  { %v634_v12 = vmul.f32 %v1290_v62, %v633_v9 }
 0xa04   :  { %914 = vmatpush.msra.mxu2 %v663_v11  ;;  %v97_v11 = vld [vmem:[%s1857_s2 + $0x1c8] sm:$0xff] }
 0xa05   :  { %v638_v13 = vsel %vm637_vm5, %v1290_v62, %v634_v12  ;;  %v100_v62 = vld [vmem:[%s1857_s2 + $0x1e0] sm:$0xff]  ;;  %vm1024_vm5 = vmand %vm1014_vm10, %vm1020_vm11 }
 0xa06   :  { %v659_v14 = vmul.f32 %v638_v13, %v1641_v24  ;;  %v1217_v13 = vsel %vm1753_vm1, 1.0, %v1329_v25  ;;  %vm1045_vm10 = vmand %vm1040_vm7, %vm1043_vm8 }
 0xa08   :  { %v662_v16 = vmax.f32 %v659_v14, 0.0  ;;  %v1218_v14 = vsel %vm1023_vm4, 1.0, %v1329_v25 }
 0xa0a   :  { %915 = vmatpush.msra.mxu2 %v662_v16  ;;  %v1219_v16 = vsel %vm1024_vm5, 1.0, %v1329_v25 }
 0xa51   :  { %v846_v17 = vpop.xlane.xlu2 %845 }
 0xa52   :  { %v853_v31 = vadd.f32 1e-13, %v846_v17  ;;  %v80_v17 = vld [vmem:[%s1857_s2 + $0x140] sm:$0xff] }
 0xa54   :  { %1291 = vrcp.f32 %v853_v31  ;;  %v96_v31 = vld [vmem:[%s1857_s2 + $0x1c0] sm:$0xff] }
 0xa59   :  { %v849_v19 = vpop.xlane.xlu0 %848 }
 0xa5a   :  { %v1292_v7 = vpop.eup %1291  ;;  %v854_v21 = vadd.f32 1e-13, %v849_v19 }
 0xa5b   :  { %v859_v22 = vmul.f32 %v1292_v7, %v1648_v34  ;;  %v79_v7 = vld [vmem:[%s1857_s2 + $0x138] sm:$0xff] }
 0xa5c   :  { %1293 = vrcp.f32 %v854_v21 }
 0xa5d   :  { %862 = vxpose.xlu2.b32.start [1/3] (short) (narrow) %v859_v22, 16 }
 0xa61   :  { %v852_v23 = vpop.xlane.xlu0 %851 }
 0xa62   :  { %v1294_v26 = vpop.eup %1293  ;;  %v855_v27 = vadd.f32 1e-13, %v852_v23  ;;  %v78_v23 = vld [vmem:[%s1857_s2 + $0x130] sm:$0xff] }
 0xa63   :  { %v860_v28 = vmul.f32 %v1294_v26, %v1653_v39 }
 0xa64   :  { %1295 = vrcp.f32 %v855_v27 }
 0xa65   :  { %863 = vxpose.xlu2.b32.cont [2/3] (short) (narrow) %v860_v28, 16 }
 0xa6a   :  { %v1296_v24 = vpop.eup %1295 }
 0xa6b   :  { %v861_v29 = vmul.f32 %v1296_v24, %v843_v48  ;;  %v87_v48 = vld [vmem:[%s1857_s2 + $0x178] sm:$0xff] }
 0xa6d   :  { %945 = vmatpush.msra.mxu3 %v861_v29  ;;  %864 = vxpose.xlu2.b32.end [3/3] (short) (narrow) %v861_v29, 16 }
 0xa6f   :  { %946 = vmatpush.msra.mxu3 %v860_v28  ;;  %v94_v28 = vld [vmem:[%s1857_s2 + $0x1b0] sm:$0xff] }
 0xa71   :  { %947 = vmatpush.msra.mxu3 %v859_v22  ;;  %v95_v22 = vld [vmem:[%s1857_s2 + $0x1b8] sm:$0xff] }
 0xa72   :  { %1211 = vmatmul.msk.f32.vlgmr.msra.gmra.mxu3 %vm21_vm0, %v1297_v15 }
 0xa73   :  { %1102 = vmatpush.msrb.mxu3 %v88_v47  ;;  %v93_v47 = vld [vmem:[%s1857_s2 + $0x1a8] sm:$0xff] }
 0xa75   :  { %1103 = vmatpush.msrb.mxu3 %v87_v48  ;;  %v90_v48 = vld [vmem:[%s1857_s2 + $0x190] sm:$0xff] }
 0xa77   :  { %1104 = vmatpush.msrb.mxu3 %v86_v59  ;;  %v1300_v59 = vld [vmem:[%s1858_s3] sm:$0xff] }
 0xa79   :  { %1105 = vmatpush.msrb.mxu3 %v85_v58 }
 0xa7a   :  { %1212 = vmatmul.msk.f32.gmra.mxu3 %vm21_vm0, %v1298_v18  ;;  %v77_v18 = vld [vmem:[%s1857_s2 + $0x128] sm:$0xff] }
 0xa7b   :  { %1106 = vmatpush.msrb.mxu3 %v84_v0 }
 0xa7d   :  { %1107 = vmatpush.msrb.mxu3 %v83_v63 }
 0xa7f   :  { %1108 = vmatpush.msrb.mxu3 %v82_v3 }
 0xa81   :  { %1109 = vmatpush.msrb.mxu3 %v81_v8 }
 0xa82   :  { %1213 = vmatmul.msk.f32.gmra.mxu3 %vm21_vm0, %v1299_v30 }
 0xa83   :  { %1110 = vmatpush.msrb.mxu3 %v80_v17 }
 0xa85   :  { %1111 = vmatpush.msrb.mxu3 %v79_v7 }
 0xa87   :  { %1112 = vmatpush.msrb.mxu3 %v78_v23 }
 0xa89   :  { %1113 = vmatpush.msrb.mxu3 %v77_v18 }
 0xaf5   :  { %v949_v32 = vpop.f32.mrf.mxu3 }
 0xaf6   :  { %v878_v33 = vpop.trf.xlu2 }
 0xaf7   :  { %1209 = vmatmul.msk.f32.vlgmr.msra.gmra.mxu2 %vm21_vm0, %v878_v33 }
 0xafd   :  { %v952_v34 = vpop.f32.mrf.mxu3 }
 0xafe   :  { %v879_v35 = vpop.trf.xlu2 }
 0xaff   :  { %1210 = vmatmul.msk.f32.gmra.mxu2 %vm21_vm0, %v879_v35 }
 0xb05   :  { %v955_v36 = vpop.f32.mrf.mxu3 }
 0xb06   :  { %971 = vmatpush.msrb.mxu1 %v955_v36 }
 0xb08   :  { %972 = vmatpush.msrb.mxu1 %v952_v34 }
 0xb0a   :  { %973 = vmatpush.msrb.mxu1 %v949_v32  ;;  %v1222_v32 = vsel %vm1045_vm10, 1.0, %v1329_v25 }
 0xb0b   :  { %1214 = vmatmul.msk.f32.vlgmr.msrb.gmra.mxu1 %vm21_vm0, %v878_v33  ;;  %v76_v33 = vld [vmem:[%s1857_s2 + $0x120] sm:$0xff]  ;;  %v1051_v36 = vadd.f32 %v1222_v32, %v1217_v13 }
 0xb0c   :  { %1122 = vmatpush.msra.mxu1 %v104_v50  ;;  %1114 = vmatpush.msrb.mxu3 %v76_v33 }
 0xb0e   :  { %1123 = vmatpush.msra.mxu1 %v103_v51  ;;  %v1101_v51 = vperm.slane %v1300_v59, 5 }
 0xb10   :  { %1124 = vmatpush.msra.mxu1 %v102_v57 }
 0xb12   :  { %1125 = vmatpush.msra.mxu1 %v101_v60 }
 0xb13   :  { %1215 = vmatmul.msk.f32.gmra.mxu1 %vm21_vm0, %v879_v35  ;;  %vm1011_vm0 = vcmp.ge.s32.totalorder %v1505_v10, %v1009_v45 }
 0xb14   :  { %vm1746_vm14 = vmand %vm1011_vm0, %vm1017_vm6  ;;  %1126 = vmatpush.msra.mxu1 %v100_v62  ;;  %vm1039_vm0 = vcmp.ge.s32.totalorder %v1505_v10, %v1038_v61  ;;  %vm1042_vm6 = vcmp.lt.s32.totalorder %v1505_v10, %v1041_v5  ;;  %v1053_v10 = vadd.f32 %v1219_v16, %v1217_v13 }
 0xb15   :  { %v1216_v12 = vsel %vm1746_vm14, 1.0, %v1329_v25  ;;  %vm1044_vm2 = vmand %vm1039_vm0, %vm1042_vm6 }
 0xb16   :  { %1127 = vmatpush.msra.mxu1 %v99_v2  ;;  %v1052_v21 = vadd.f32 %v1218_v14, %v1216_v12  ;;  %v1221_v30 = vsel %vm1044_vm2, 1.0, %v1329_v25  ;;  %v92_v25 = vld [vmem:[%s1857_s2 + $0x1a0] sm:$0xff] }
 0xb17   :  { %v1050_v35 = vadd.f32 %v1221_v30, %v1216_v12 }
 0xb18   :  { %1128 = vmatpush.msra.mxu1 %v98_v6 }
 0xb1a   :  { %1129 = vmatpush.msra.mxu1 %v97_v11 }
 0xb1c   :  { %1130 = vmatpush.msra.mxu1 %v96_v31 }
 0xb1e   :  { %1131 = vmatpush.msra.mxu1 %v95_v22 }
 0xb20   :  { %1132 = vmatpush.msra.mxu1 %v94_v28 }
 0xb22   :  { %1133 = vmatpush.msra.mxu1 %v93_v47 }
 0xb24   :  { %1134 = vmatpush.msra.mxu1 %v92_v25 }
 0xb26   :  { %1135 = vmatpush.msra.mxu1 %v91_v54 }
 0xb28   :  { %1136 = vmatpush.msra.mxu1 %v90_v48 }
 0xb2a   :  { %1137 = vmatpush.msra.mxu1 %v89_v49 }
 0xb7a   :  { %v1680_v37 = vpop.f32.mrf.mxu2 }
 0xb7b   :  { %v1142_v38 = vsel %vm200_vm3, %v1680_v37, 0.0  ;;  %983 = vrot.lane.b32.xlu0 %v1680_v37, %s1328_s19 }
 0xb7c   :  { %1148 = vst [vmem:[#allocation2] sm:$0xff] %v1142_v38  ;;  %v75_v38 = vld [vmem:[%s1857_s2 + $0x118] sm:$0xff] }
 0xb7d   :  { %1115 = vmatpush.msrb.mxu3 %v75_v38 }
 0xb82   :  { %v1686_v39 = vpop.f32.mrf.mxu2 }
 0xb83   :  { %v1143_v40 = vsel %vm200_vm3, %v1686_v39, 0.0  ;;  %991 = vrot.lane.b32.xlu1 %v1686_v39, %s1331_s1  ;;  %985 = vrot.lane.b32.xlu0 %v1686_v39, %s1328_s19 }
 0xb84   :  { %1149 = vst [vmem:[#allocation2 + $0x8] sm:$0xff] %v1143_v40 }
 0xb88   :  { %v975_v41 = vpop.f32.mrf.mxu1 }
 0xb89   :  { %v1144_v42 = vsel %vm807_vm15, %v975_v41, 0.0 }
 0xb8a   :  { %1150 = vst [vmem:[#allocation2 + $0x10] sm:$0xff] %v1144_v42  ;;  %v74_v42 = vld [vmem:[%s1857_s2 + $0x110] sm:$0xff] }
 0xb8b   :  { %997 = vrot.lane.b32.xlu1 %v1686_v39, %s1332_s24  ;;  %989 = vrot.lane.b32.xlu0 %v1680_v37, %s1331_s1 }
 0xb8c   :  { %1116 = vmatpush.msrb.mxu3 %v74_v42 }
 0xb90   :  { %v978_v20 = vpop.f32.mrf.mxu1 }
 0xb91   :  { %v1145_v43 = vsel %vm807_vm15, %v978_v20, 0.0 }
 0xb92   :  { %1151 = vst [vmem:[#allocation2 + $0x18] sm:$0xff] %v1145_v43 }
 0xb93   :  { %995 = vrot.lane.b32.xlu1 %v1680_v37, %s1332_s24 }
 0xbed   :  { %v1718_v52 = vpop.permute.xlu0 %983 }
 0xbf5   :  { %v992_v4 = vpop.permute.xlu1 %991  ;;  %v986_v9 = vpop.permute.xlu0 %985 }
 0xbf6   :  { %v1002_v19 = vsel %vm200_vm3, %v1686_v39, %v986_v9  ;;  %v1001_v39 = vsel %vm200_vm3, %v1680_v37, %v1718_v52  ;;  %v73_v37 = vld [vmem:[%s1857_s2 + $0x108] sm:$0xff]  ;;  %s1334_s2 = smov 128  }
 0xbf7   :  { %v1004_v27 = vsel %vm291_vm13, %v1002_v19, %v992_v4  ;;  %1117 = vmatpush.msrb.mxu3 %v73_v37 }
 0xbfd   :  { %v998_v26 = vpop.permute.xlu1 %997  ;;  %v990_v34 = vpop.permute.xlu0 %989 }
 0xbfe   :  { %v1007_v24 = vsel %vm1005_vm9, %v1004_v27, %v998_v26  ;;  %v1003_v40 = vsel %vm291_vm13, %v1001_v39, %v990_v34 }
 0xbff   :  { %v1056_v29 = vmul.f32 %v1052_v21, %v1007_v24  ;;  %v1057_v15 = vmul.f32 %v1053_v10, %v1007_v24 }
 0xc01   :  { %1075 = vmatpush.msra.mxu0 %v1056_v29  ;;  %1095 = vmatpush.msrb.mxu2 %v1057_v15 }
 0xc05   :  { %v996_v41 = vpop.permute.xlu1 %995 }
 0xc06   :  { %v1006_v20 = vsel %vm1005_vm9, %v1003_v40, %v996_v41 }
 0xc07   :  { %v1054_v43 = vmul.f32 %v1050_v35, %v1006_v20  ;;  %v1055_v45 = vmul.f32 %v1051_v36, %v1006_v20 }
 0xc09   :  { %1076 = vmatpush.msra.mxu0 %v1054_v43  ;;  %1096 = vmatpush.msrb.mxu2 %v1055_v45 }
 0xc0a   :  { %1223 = vmatmul.msk.f32.vlgmr.msra.gmra.mxu0 %vm807_vm15, %v1204_v46  ;;  %1224 = vmatmul.msk.f32.vlgmr.msrb.gmra.mxu2 %vm807_vm15, %v1204_v46 }
 0xc87   :  { %v1078_v50 = vpop.f32.mrf.mxu0 }
 0xc88   :  { %1118 = vmatmul.f32.vlgmr.msrb.gmra.mxu3 %v1078_v50 }
 0xc8d   :  { %v1098_v44 = vpop.f32.mrf.mxu2 }
 0xc8e   :  { %1138 = vmatmul.f32.vlgmr.msra.gmra.mxu1 %v1098_v44 }
 0xd0b   :  { %v1119_v52 = vpop.f32.mrf.mxu3  ;;  %v1139_v53 = vpop.f32.mrf.mxu1 }
 0xd0c   :  { %v1120_v56 = vadd.f32 %v1119_v52, %v1101_v51 }
 0xd0e   :  { %v1140_v57 = vadd.f32 %v1139_v53, %v1120_v56 }
 0xd10   :  { %v1147_v58 = vsel %vm200_vm3, %v1140_v57, 0.0 }
 0xd11   :  { %1153 = vst [vmem:[#allocation2 + $0x28] sm:$0xff] %v1147_v58 }
 0xd12   :  { %1166 = dma.vmem_to_hbm [thread:$0]  %s1159_s8, 768, %s1161_s11, [#allocation3], %s1334_s2, %s1334_s2, %s1335_s12  }
 0xd13   :  { %1325 = dma.done.wait [#allocation3], 768  }
 0xd14   :  { %1326 = vsyncadd [#allocation3], 4294966528 }
 0xd15   :  { %1171 = vsyncpa [#allocation3], 1 }

</bundles_post_ra>
